<compile_context>
chip_gen: v5e
topology: v5e:2x2
jax: 0.10.0
libtpu: 0.0.40
codegen_flags: <defaults>
</compile_context>

<pallas_src>
import functools
import math

import jax
import jax.numpy as jnp
from jax.experimental import pallas as pl
from jax.experimental.pallas import tpu as pltpu


# ----------------------------------------------------------------------------
# Kernel 1: embedding folded into layer-0 input projection (time-major rows).
#   out[r, :] = x_cat[r] @ W_fold + posg[r // B]            (bf16 output)
#   The posg broadcast over batch is expressed as a constant one-hot matmul
#   (e_ref), keeping the kernel a pair of MXU ops with a lane-dense store.
# ----------------------------------------------------------------------------
def embed_gates_kernel(xcat_ref, posg_ref, e_ref, wfold_ref, out_ref):
    acc = jnp.dot(xcat_ref[...].astype(wfold_ref.dtype), wfold_ref[...],
                  preferred_element_type=jnp.float32)
    acc = acc + jnp.dot(e_ref[...], posg_ref[...],
                        preferred_element_type=jnp.float32)
    out_ref[...] = acc.astype(out_ref.dtype)


# ----------------------------------------------------------------------------
# Kernel 2: stacked LSTM recurrence over streamed gates0 + deferred projection.
#   grid = (batch blocks ["parallel"], time chunks ["arbitrary"])
#   g0_ref:   (tl2, B_blk, 4*Hp) bf16  precomputed x@W_ih0 (+pos+bias) chunk
#   whh0_ref: (Hp, 4*Hp)               layer-0 recurrent weights
#   wih_r/whh_r: (max(1,nl-1), Hp, 4*Hp) weights for layers >= 1
#   brest_ref:(max(1,nl-1), 1, 4*Hp)   biases for layers >= 1
#   wproj/bproj: output projection (c_out padded to Cp lanes)
#   out_ref:  (pred_len*B_pad, Cp)     written once, at the last time chunk
# ----------------------------------------------------------------------------
def lstm_kernel(g0_ref, whh0_ref, wih_r_ref, whh_r_ref, brest_ref,
                wproj_ref, bproj_ref, out_ref, h_scr, c_scr, hlast_scr,
                *, first_out, B_pad):
    tl2, B_blk, G = g0_ref.shape
    n_layers = h_scr.shape[0]
    Hp = h_scr.shape[2]
    mxu_dt = whh0_ref.dtype

    i_t = pl.program_id(1)

    @pl.when(i_t == 0)
    def _():
        h_scr[...] = jnp.zeros_like(h_scr)
        c_scr[...] = jnp.zeros_like(c_scr)
        if B_pad != B_blk:        # only needed when pad rows exist (tiny batches)
            hlast_scr[...] = jnp.zeros_like(hlast_scr)

    # Loop-invariant bias broadcasts hoisted out of the recurrence (per chunk).
    bias_b = [jnp.broadcast_to(brest_ref[l - 1], (B_blk, G))
              for l in range(1, n_layers)]

    def cell(gates, c):
        # Gate slices are lane-tile aligned (Hp = k*128).
        i_g = jax.nn.sigmoid(gates[:, 0 * Hp:1 * Hp])
        f_g = jax.nn.sigmoid(gates[:, 1 * Hp:2 * Hp])
        g_g = jnp.tanh(gates[:, 2 * Hp:3 * Hp])
        o_g = jax.nn.sigmoid(gates[:, 3 * Hp:4 * Hp])
        c_new = f_g * c + i_g * g_g
        h_new = o_g * jnp.tanh(c_new)
        return h_new, c_new

    t_base = i_t * tl2

    @pl.loop(0, tl2)
    def _(tl_i):
        # ---- layer 0: input projection (incl. pos + bias) is precomputed -----
        gates = (g0_ref[tl_i].astype(jnp.float32)
                 + jnp.dot(h_scr[0].astype(mxu_dt), whh0_ref[...],
                           preferred_element_type=jnp.float32))
        h_new, c_new = cell(gates, c_scr[0])
        h_scr[0] = h_new
        c_scr[0] = c_new
        inp = h_new

        # ---- layers >= 1: two dots accumulated in f32 (no concatenate) -------
        for l in range(1, n_layers):
            gates = (jnp.dot(inp.astype(mxu_dt), wih_r_ref[l - 1],
                             preferred_element_type=jnp.float32)
                     + jnp.dot(h_scr[l].astype(mxu_dt), whh_r_ref[l - 1],
                               preferred_element_type=jnp.float32)
                     + bias_b[l - 1])
            h_new, c_new = cell(gates, c_scr[l])
            h_scr[l] = h_new
            c_scr[l] = c_new
            inp = h_new

        t_g = t_base + tl_i

        # Stash the last-layer hidden state for only the final pred_len steps,
        # laid out flat (pred_len*B_pad, Hp) so the projection is one matmul.
        @pl.when(t_g >= first_out)
        def _():
            off = pl.multiple_of((t_g - first_out) * B_pad, 8)
            hlast_scr[pl.ds(off, B_blk), :] = inp.astype(hlast_scr.dtype)

    # ---- deferred output projection: one lane-dense matmul + single store ---
    @pl.when(i_t == pl.num_programs(1) - 1)
    def _():
        proj = (jnp.dot(hlast_scr[...].astype(mxu_dt), wproj_ref[...],
                        preferred_element_type=jnp.float32) + bproj_ref[...])
        out_ref[...] = proj.astype(out_ref.dtype)


# ----------------------------------------------------------------------------
# Wrapper helpers
# ----------------------------------------------------------------------------
def positional_embedding(seq_len, d_model):
    pos = jnp.arange(seq_len, dtype=jnp.float32)[:, None]
    div = jnp.exp(jnp.arange(0, d_model, 2, dtype=jnp.float32)
                  * -(math.log(10000.0) / d_model))
    pe = jnp.zeros((seq_len, d_model), dtype=jnp.float32)
    pe = pe.at[:, 0::2].set(jnp.sin(pos * div))
    pe = pe.at[:, 1::2].set(jnp.cos(pos * div[: d_model // 2]))
    return pe


def _num_tensorcores():
    """Best-effort TensorCore count; default 1 (never split on single-TC chips)."""
    try:
        info = pltpu.get_tpu_info()
        for name in ("num_cores", "core_count", "num_tensorcores",
                     "tensorcore_count", "cores_per_chip", "num_cores_per_chip"):
            v = getattr(info, name, None)
            if isinstance(v, int) and 0 < v <= 16:
                return v
    except Exception:
        pass
    try:
        kind = jax.devices()[0].device_kind.lower()
        if ("v4" in kind) or ("v5p" in kind) or ("7" in kind):
            return 2
    except Exception:
        pass
    return 1


def _vmem_limit(est_bytes):
    """Generation-aware scoped-VMEM limit (only set when the default is tight)."""
    try:
        cap = int(pltpu.get_tpu_info().vmem_capacity_bytes)
    except Exception:
        cap = 64 * 1024 * 1024
    ceiling = int(cap * 0.85)          # leave headroom for compiler scratch
    default_scoped = 16 * 1024 * 1024  # conservative (v5e default)
    if est_bytes <= default_scoped // 2:
        return {}
    want = int(max(est_bytes * 3 // 2, 2 * default_scoped))
    return {"vmem_limit_bytes": min(ceiling, want)}


def _time_tile1(L, B, G, target_bytes=4 << 20):
    """Time tile for Kernel 1: tl | L, (tl*B) % 8 == 0, bf16 out block <= target."""
    max_rows = max(8, target_bytes // (2 * G))
    tl = max(1, min(L, max_rows // max(B, 1)))
    while tl > 1 and not (L % tl == 0 and (tl * B) % 8 == 0):
        tl -= 1
    if tl <= 1:
        return L
    return tl


def _time_tile2(L, B_blk, G, target_bytes=4 << 20):
    """Time chunk for Kernel 2 streaming of g0: tl2 | L, bf16 block <= target."""
    per_t = max(1, B_blk * G * 2)
    tl2 = min(L, max(1, target_bytes // per_t))
    while tl2 > 1 and L % tl2 != 0:
        tl2 -= 1
    return max(1, tl2)


def _pad_gate_cols(w, H, Hp):
    """(..., 4*H) -> (..., 4*Hp): zero-pad each gate block to Hp lanes."""
    if Hp == H:
        return w
    parts = [w[..., k * H:(k + 1) * H] for k in range(4)]
    pad = [(0, 0)] * (w.ndim - 1) + [(0, Hp - H)]
    return jnp.concatenate([jnp.pad(p, pad) for p in parts], axis=-1)


def _pad_axis(w, axis, new_size):
    if w.shape[axis] == new_size:
        return w
    pad = [(0, 0)] * w.ndim
    pad[axis] = (0, new_size - w.shape[axis])
    return jnp.pad(w, pad)


def prepare_params(raw, mxu_dtype=jnp.bfloat16):
    """Pad / fuse / fold / cast PyTorch-layout params into kernel layout."""
    wih, whh, bias = raw["wih"], raw["whh"], raw["bias"]   # (nl,D,4H),(nl,H,4H),(nl,1,4H)
    wproj, bproj = raw["wproj"], raw["bproj"]
    w_conv, w_temp = raw["w_conv"], raw["w_temp"]
    n_layers, D, _ = wih.shape
    H = whh.shape[1]
    assert D == H, "LSTM_Block uses input_size == hidden_size == d_model"
    Hp = ((H + 127) // 128) * 128
    c_out = wproj.shape[1]
    Cp = ((c_out + 127) // 128) * 128

    wih_g = _pad_gate_cols(wih, H, Hp)                         # (nl, D, 4Hp)
    whh_g = _pad_gate_cols(whh, H, Hp)                         # (nl, H, 4Hp)
    bias_g = _pad_gate_cols(bias, H, Hp).astype(jnp.float32)   # (nl, 1, 4Hp)

    wih0 = wih_g[0].astype(jnp.float32)                        # (D, 4Hp) f32
    # Algebraic fold: (xu@Wc + xm@Wt)@Wih0 == xu@(Wc@Wih0) + xm@(Wt@Wih0)
    w_fold = jnp.concatenate([w_conv.astype(jnp.float32) @ wih0,
                              w_temp.astype(jnp.float32) @ wih0], axis=0)

    whh0 = _pad_axis(whh_g[0], 0, Hp).astype(mxu_dtype)        # (Hp, 4Hp)
    if n_layers > 1:
        wih_rest = _pad_axis(wih_g[1:], 1, Hp).astype(mxu_dtype)   # (nl-1, Hp, 4Hp)
        whh_rest = _pad_axis(whh_g[1:], 1, Hp).astype(mxu_dtype)
    else:
        wih_rest = jnp.zeros((1, 8, 128), mxu_dtype)           # dummies, never read
        whh_rest = jnp.zeros((1, 8, 128), mxu_dtype)

    wproj_p = _pad_axis(_pad_axis(wproj, 0, Hp), 1, Cp).astype(mxu_dtype)

    return {
        "w_fold": w_fold.astype(mxu_dtype),    # (3*c_in + mark, 4Hp)
        "wih0_f32": wih0,                      # (D, 4Hp) f32, for pos@Wih0 in wrapper
        "bias_all": bias_g,                    # (nl, 1, 4Hp) f32
        "whh0": whh0, "wih_rest": wih_rest, "whh_rest": whh_rest,
        "wproj": wproj_p,                      # (Hp, Cp)
        "bproj": bproj.astype(jnp.float32),    # (1, c_out) unpadded (padded in wrapper)
    }


@functools.partial(jax.jit, static_argnames=("pred_len",))
def model_forward(x_enc, x_mark_enc, params, pred_len):
    B, L, c_in = x_enc.shape
    mark = x_mark_enc.shape[-1]
    w_fold, wih0_f = params["w_fold"], params["wih0_f32"]
    bias_all = params["bias_all"]
    whh0, wih_r, whh_r = params["whh0"], params["wih_rest"], params["whh_rest"]
    wproj, bproj_raw = params["wproj"], params["bproj"]

    D, G = wih0_f.shape
    Hp = whh0.shape[0]
    n_layers = bias_all.shape[0]
    c_out = bproj_raw.shape[1]
    Cp = wproj.shape[1]
    Kin = w_fold.shape[0]
    assert Kin == 3 * c_in + mark
    assert pred_len <= L

    # ---- circular conv1d (k=3, pad=1) unfolded + mark features, time-major ----
    x_unf = jnp.stack([jnp.roll(x_enc, 1 - k, axis=1) for k in range(3)], axis=2)
    x_unf = x_unf.transpose(1, 0, 2, 3).reshape(L * B, 3 * c_in)      # (L*B, 3*c_in)
    x_mark_t = x_mark_enc.transpose(1, 0, 2).reshape(L * B, mark)     # (L*B, mark)
    x_cat = jnp.concatenate([x_unf, x_mark_t], axis=1)                # (L*B, Kin)

    # ---- positional + layer-0 bias folded into a per-timestep gate bias -------
    pos = positional_embedding(L, D)                                  # (L, D)
    posg = jnp.dot(pos, wih0_f) + bias_all[0]                         # (L, G) f32

    # ---- Kernel 1: folded embedding -> layer-0 input gates (bf16) -------------
    tl = _time_tile1(L, B, G)
    rows = tl * B
    n_tblk = L // tl
    # one-hot expansion: e_mat[r, r // B] = 1  (broadcast posg over batch via MXU)
    e_mat = jnp.repeat(jnp.eye(tl, dtype=jnp.float32), B, axis=0)     # (rows, tl)

    est1 = (2 * rows * Kin * 4 + 2 * tl * G * 4 + 2 * rows * tl * 4
            + 2 * Kin * G * 2 + 2 * rows * G * 2 + rows * G * 4)

    gates0 = pl.pallas_call(
        embed_gates_kernel,
        out_shape=jax.ShapeDtypeStruct((L * B, G), jnp.bfloat16),
        grid_spec=pltpu.PrefetchScalarGridSpec(
            num_scalar_prefetch=0,
            grid=(n_tblk,),
            in_specs=[
                pl.BlockSpec((rows, Kin), lambda i: (i, 0)),
                pl.BlockSpec((tl, G), lambda i: (i, 0)),
                pl.BlockSpec((rows, tl), lambda i: (0, 0)),
                pl.BlockSpec((Kin, G), lambda i: (0, 0)),
            ],
            out_specs=pl.BlockSpec((rows, G), lambda i: (i, 0)),
        ),
        compiler_params=pltpu.CompilerParams(
            dimension_semantics=("parallel",), **_vmem_limit(est1)),
    )(x_cat, posg, e_mat, w_fold)
    g0_3d = gates0.reshape(L, B, G)     # time-major rows -> free (layout-preserving)

    # ---- Kernel 2: stacked LSTM recurrence + deferred projection --------------
    # Split the batch across cores only on multi-TensorCore parts (v7x / megacore).
    if _num_tensorcores() >= 2 and B % 16 == 0:
        B_blk = B // 2
    else:
        B_blk = B
    n_bblk = B // B_blk
    B_pad = ((B_blk + 7) // 8) * 8
    hl_dtype = jnp.bfloat16 if (B_blk % 8 == 0) else jnp.float32
    hl_bytes = jnp.dtype(hl_dtype).itemsize

    tl2 = _time_tile2(L, B_blk, G)
    n_tchunk = L // tl2

    if n_layers > 1:
        b_rest = bias_all[1:]
    else:
        b_rest = jnp.zeros((1, 1, 128), jnp.float32)   # dummy, never read
    bproj_p = jnp.pad(bproj_raw, ((0, 0), (0, Cp - c_out)))

    est2 = (2 * tl2 * B_blk * G * 2
            + 2 * Hp * G * 2
            + 2 * (wih_r.size + whh_r.size) * 2
            + 2 * b_rest.size * 4
            + 2 * (Hp * Cp * 2 + Cp * 4)
            + 2 * pred_len * B_pad * Cp * 4
            + 2 * n_layers * B_blk * Hp * 4 * 2
            + pred_len * B_pad * Hp * hl_bytes
            + 6 * B_blk * G * 4)

    kern = functools.partial(lstm_kernel, first_out=L - pred_len, B_pad=B_pad)

    out2d = pl.pallas_call(
        kern,
        out_shape=jax.ShapeDtypeStruct((n_bblk * pred_len * B_pad, Cp), jnp.float32),
        grid_spec=pltpu.PrefetchScalarGridSpec(
            num_scalar_prefetch=0,
            grid=(n_bblk, n_tchunk),
            in_specs=[
                pl.BlockSpec((tl2, B_blk, G), lambda i, j: (j, i, 0)),   # g0 (streamed)
                pl.BlockSpec((Hp, G), lambda i, j: (0, 0)),              # whh0
                pl.BlockSpec(wih_r.shape, lambda i, j: (0, 0, 0)),       # W_ih layers>=1
                pl.BlockSpec(whh_r.shape, lambda i, j: (0, 0, 0)),       # W_hh layers>=1
                pl.BlockSpec(b_rest.shape, lambda i, j: (0, 0, 0)),      # bias layers>=1
                pl.BlockSpec((Hp, Cp), lambda i, j: (0, 0)),             # wproj
                pl.BlockSpec((1, Cp), lambda i, j: (0, 0)),              # bproj
            ],
            out_specs=pl.BlockSpec((pred_len * B_pad, Cp), lambda i, j: (i, 0)),
            scratch_shapes=[
                pltpu.VMEM((n_layers, B_blk, Hp), jnp.float32),          # h
                pltpu.VMEM((n_layers, B_blk, Hp), jnp.float32),          # c
                pltpu.VMEM((pred_len * B_pad, Hp), hl_dtype),            # last-layer h
            ],
        ),
        compiler_params=pltpu.CompilerParams(
            dimension_semantics=("parallel", "arbitrary"), **_vmem_limit(est2)),
    )(g0_3d, whh0, wih_r, whh_r, b_rest, wproj, bproj_p)

    # rows are (pred, batch)-major per batch block, with B_pad/Cp padding
    dec_out = out2d.reshape(n_bblk, pred_len, B_pad, Cp)[:, :, :B_blk, :c_out]
    dec_out = dec_out.transpose(0, 2, 1, 3).reshape(B, pred_len, c_out)
    return dec_out


# ----------------------------------------------------------------------------
# PyTorch-layout parameter init (eval-mode model; dropout = identity)
# ----------------------------------------------------------------------------
def init_params(key, enc_in, d_model, mark_dim, e_layers, c_out):
    ks = jax.random.split(key, 8)
    H = d_model
    scale = 1.0 / math.sqrt(H)
    # TokenEmbedding conv weight (d_model, c_in, 3) -> matmul form (3*c_in, d_model)
    w_conv_t = jax.random.normal(ks[0], (d_model, enc_in, 3), jnp.float32) * 0.1
    w_conv = jnp.transpose(w_conv_t, (2, 1, 0)).reshape(3 * enc_in, d_model)
    # TimeFeatureEmbedding linear (no bias)
    w_temp = jax.random.normal(ks[1], (mark_dim, d_model), jnp.float32) * 0.1
    # LSTM weights, PyTorch gate order (i, f, g, o), transposed for right-matmul
    wih = jax.random.uniform(ks[2], (e_layers, d_model, 4 * H), jnp.float32, -scale, scale)
    whh = jax.random.uniform(ks[3], (e_layers, H, 4 * H), jnp.float32, -scale, scale)
    b_ih = jax.random.uniform(ks[4], (e_layers, 1, 4 * H), jnp.float32, -scale, scale)
    b_hh = jax.random.uniform(ks[5], (e_layers, 1, 4 * H), jnp.float32, -scale, scale)
    wproj = jax.random.uniform(ks[6], (H, c_out), jnp.float32, -scale, scale)
    bproj = jax.random.uniform(ks[7], (1, c_out), jnp.float32, -scale, scale)
    return {
        "w_conv": w_conv, "w_temp": w_temp,
        "wih": wih, "whh": whh, "bias": b_ih + b_hh,
        "wproj": wproj, "bproj": bproj,
    }


# ----------------------------------------------------------------------------
# Pure-JAX f32 reference (for a loose bf16-tolerance correctness check)
# ----------------------------------------------------------------------------
def reference_forward(x_enc, x_mark_enc, raw, pred_len):
    B, L, c_in = x_enc.shape
    wih, whh, bias = raw["wih"], raw["whh"], raw["bias"]
    n_layers, D, _ = wih.shape
    H = whh.shape[1]
    x_unf = jnp.stack([jnp.roll(x_enc, 1 - k, axis=1) for k in range(3)], axis=2)
    x_unf = x_unf.reshape(B, L, 3 * c_in)
    emb = (x_unf @ raw["w_conv"] + x_mark_enc @ raw["w_temp"]
           + positional_embedding(L, D)[None])

    def step(carry, x_t):
        hs, cs = carry
        new_h, new_c = [], []
        inp = x_t
        for l in range(n_layers):
            g = inp @ wih[l] + hs[l] @ whh[l] + bias[l][0]
            i = jax.nn.sigmoid(g[:, :H]); f = jax.nn.sigmoid(g[:, H:2 * H])
            gg = jnp.tanh(g[:, 2 * H:3 * H]); o = jax.nn.sigmoid(g[:, 3 * H:4 * H])
            c = f * cs[l] + i * gg
            h = o * jnp.tanh(c)
            new_h.append(h); new_c.append(c)
            inp = h
        return (new_h, new_c), inp

    hs = [jnp.zeros((B, H), jnp.float32) for _ in range(n_layers)]
    cs = [jnp.zeros((B, H), jnp.float32) for _ in range(n_layers)]
    _, h_seq = jax.lax.scan(step, (hs, cs), jnp.swapaxes(emb, 0, 1))  # (L, B, H)
    out = h_seq @ raw["wproj"] + raw["bproj"]                         # (L, B, c_out)
    return jnp.swapaxes(out, 0, 1)[:, -pred_len:, :]


if __name__ == "__main__":
    # Small config: enc_in=4, d_model=32, e_layers=2, c_out=4, pred_len=4,
    # freq='h' -> mark_dim=4, batch=2, seq_len=8
    B, L, enc_in, d_model, e_layers, c_out, pred_len, mark_dim = \
        2, 8, 4, 32, 2, 4, 4, 4

    key = jax.random.PRNGKey(0)
    k_x, k_m, k_p = jax.random.split(key, 3)
    x_enc = jax.random.normal(k_x, (B, L, enc_in), jnp.float32)
    x_mark_enc = jax.random.normal(k_m, (B, L, mark_dim), jnp.float32)
    raw_params = init_params(k_p, enc_in, d_model, mark_dim, e_layers, c_out)
    params = prepare_params(raw_params)

    out = model_forward(x_enc, x_mark_enc, params, pred_len)
    jax.block_until_ready(out)
    assert out.shape == (B, pred_len, c_out), out.shape

    ref = reference_forward(x_enc, x_mark_enc, raw_params, pred_len)
    err = float(jnp.max(jnp.abs(out - ref)))
    assert err < 5e-2, f"max abs error vs f32 reference: {err}"

    print("KERNEL_OK")
</pallas_src>

<mosaic_0001>
module attributes {stable_mosaic.version = 11 : i64} {
  func.func @embed_gates_kernel(%arg0: i32, %arg1: memref<16x16xf32, #tpu.memory_space<vmem>>, %arg2: memref<8x512xf32, #tpu.memory_space<vmem>>, %arg3: memref<16x8xf32, #tpu.memory_space<vmem>>, %arg4: memref<16x512xbf16, #tpu.memory_space<vmem>>, %arg5: memref<16x512xbf16, #tpu.memory_space<vmem>>) attributes {dimension_semantics = [#tpu.dimension_semantics<parallel>], iteration_bounds = array<i64: 1>, scalar_prefetch = 0 : i64, scratch_operands = 0 : i64, tpu.core_type = #tpu.core_type<tc>, window_params = [{transform_indices = @transform_0, window_bounds = array<i64: 16, 16>}, {transform_indices = @transform_1, window_bounds = array<i64: 8, 512>}, {pipeline_mode = #tpu.pipeline_mode<synchronous>, transform_indices = @transform_2, window_bounds = array<i64: 16, 8>}, {pipeline_mode = #tpu.pipeline_mode<synchronous>, transform_indices = @transform_3, window_bounds = array<i64: 16, 512>}, {transform_indices = @transform_4, window_bounds = array<i64: 16, 512>}]} {
    %c0 = arith.constant 0 : index
    %c0_0 = arith.constant 0 : index
    %0 = vector.load %arg1[%c0, %c0_0] : memref<16x16xf32, #tpu.memory_space<vmem>>, vector<16x16xf32>
    %1 = arith.truncf %0 : vector<16x16xf32> to vector<16x16xbf16>
    %c0_1 = arith.constant 0 : index
    %c0_2 = arith.constant 0 : index
    %2 = vector.load %arg4[%c0_1, %c0_2] : memref<16x512xbf16, #tpu.memory_space<vmem>>, vector<16x512xbf16>
    %cst = arith.constant dense<0.000000e+00> : vector<16x512xf32>
    %3 = tpu.matmul %1, %2, %cst {dimension_numbers = #tpu.dot_dimension_numbers<[1], [0], [0], [1], [0, 0, 1, 1], [], []>} : vector<16x16xbf16>, vector<16x512xbf16>, vector<16x512xf32> -> vector<16x512xf32>
    %c0_3 = arith.constant 0 : index
    %c0_4 = arith.constant 0 : index
    %4 = vector.load %arg3[%c0_3, %c0_4] : memref<16x8xf32, #tpu.memory_space<vmem>>, vector<16x8xf32>
    %c0_5 = arith.constant 0 : index
    %c0_6 = arith.constant 0 : index
    %5 = vector.load %arg2[%c0_5, %c0_6] : memref<8x512xf32, #tpu.memory_space<vmem>>, vector<8x512xf32>
    %cst_7 = arith.constant dense<0.000000e+00> : vector<16x512xf32>
    %6 = tpu.matmul %4, %5, %cst_7 {dimension_numbers = #tpu.dot_dimension_numbers<[1], [0], [0], [1], [0, 0, 1, 1], [], []>} : vector<16x8xf32>, vector<8x512xf32>, vector<16x512xf32> -> vector<16x512xf32>
    %7 = arith.addf %3, %6 : vector<16x512xf32>
    %8 = arith.truncf %7 : vector<16x512xf32> to vector<16x512xbf16>
    %c0_8 = arith.constant 0 : index
    %c0_9 = arith.constant 0 : index
    %9 = vector.load %arg5[%c0_8, %c0_9] : memref<16x512xbf16, #tpu.memory_space<vmem>>, vector<16x512xbf16>
    tpu.vector_store %arg5[%c0_8, %c0_9], %8 {strides = array<i32>} : memref<16x512xbf16, #tpu.memory_space<vmem>>, vector<16x512xbf16>,
    return
  }
  func.func @transform_0(%arg0: i32) -> (i32, i32) {
    %c0_i32 = arith.constant 0 : i32
    %c0_i32_0 = arith.constant 0 : i32
    return %arg0, %c0_i32 : i32, i32
  }
  func.func @transform_1(%arg0: i32) -> (i32, i32) {
    %c0_i32 = arith.constant 0 : i32
    %c0_i32_0 = arith.constant 0 : i32
    return %arg0, %c0_i32 : i32, i32
  }
  func.func @transform_2(%arg0: i32) -> (i32, i32) {
    %c0_i32 = arith.constant 0 : i32
    %c0_i32_0 = arith.constant 0 : i32
    %c0_i32_1 = arith.constant 0 : i32
    return %c0_i32, %c0_i32_0 : i32, i32
  }
  func.func @transform_3(%arg0: i32) -> (i32, i32) {
    %c0_i32 = arith.constant 0 : i32
    %c0_i32_0 = arith.constant 0 : i32
    %c0_i32_1 = arith.constant 0 : i32
    return %c0_i32, %c0_i32_0 : i32, i32
  }
  func.func @transform_4(%arg0: i32) -> (i32, i32) {
    %c0_i32 = arith.constant 0 : i32
    %c0_i32_0 = arith.constant 0 : i32
    return %arg0, %c0_i32 : i32, i32
  }
}

module attributes {stable_mosaic.version = 11 : i64} {
  func.func @lstm_kernel(%arg0: i32, %arg1: i32, %arg2: memref<8x2x512xbf16, #tpu.memory_space<vmem>>, %arg3: memref<128x512xbf16, #tpu.memory_space<vmem>>, %arg4: memref<1x128x512xbf16, #tpu.memory_space<vmem>>, %arg5: memref<1x128x512xbf16, #tpu.memory_space<vmem>>, %arg6: memref<1x1x512xf32, #tpu.memory_space<vmem>>, %arg7: memref<128x128xbf16, #tpu.memory_space<vmem>>, %arg8: memref<1x128xf32, #tpu.memory_space<vmem>>, %arg9: memref<32x128xf32, #tpu.memory_space<vmem>>, %arg10: memref<2x2x128xf32, #tpu.memory_space<vmem>>, %arg11: memref<2x2x128xf32, #tpu.memory_space<vmem>>, %arg12: memref<32x128xf32, #tpu.memory_space<vmem>>) attributes {dimension_semantics = [#tpu.dimension_semantics<parallel>, #tpu.dimension_semantics<arbitrary>], iteration_bounds = array<i64: 1, 1>, scalar_prefetch = 0 : i64, scratch_operands = 3 : i64, tpu.core_type = #tpu.core_type<tc>, window_params = [{transform_indices = @transform_0, window_bounds = array<i64: 8, 2, 512>}, {pipeline_mode = #tpu.pipeline_mode<synchronous>, transform_indices = @transform_1, window_bounds = array<i64: 128, 512>}, {pipeline_mode = #tpu.pipeline_mode<synchronous>, transform_indices = @transform_2, window_bounds = array<i64: 1, 128, 512>}, {pipeline_mode = #tpu.pipeline_mode<synchronous>, transform_indices = @transform_3, window_bounds = array<i64: 1, 128, 512>}, {pipeline_mode = #tpu.pipeline_mode<synchronous>, transform_indices = @transform_4, window_bounds = array<i64: 1, 1, 512>}, {pipeline_mode = #tpu.pipeline_mode<synchronous>, transform_indices = @transform_5, window_bounds = array<i64: 128, 128>}, {pipeline_mode = #tpu.pipeline_mode<synchronous>, transform_indices = @transform_6, window_bounds = array<i64: 1, 128>}, {transform_indices = @transform_7, window_bounds = array<i64: 32, 128>}]} {
    %c0_i32 = arith.constant 0 : i32
    %0 = arith.cmpi eq, %arg1, %c0_i32 : i32
    %1 = arith.extui %0 : i1 to i32
    %c0_i32_0 = arith.constant 0 : i32
    %2 = arith.cmpi ne, %1, %c0_i32_0 : i32
    scf.if %2 {
      %cst = arith.constant 0.000000e+00 : f32
      %12 = vector.broadcast %cst : f32 to vector<2x2x128xf32>
      %c0_8 = arith.constant 0 : index
      %c0_9 = arith.constant 0 : index
      %c0_10 = arith.constant 0 : index
      %13 = vector.load %arg10[%c0_8, %c0_9, %c0_10] : memref<2x2x128xf32, #tpu.memory_space<vmem>>, vector<2x2x128xf32>
      tpu.vector_store %arg10[%c0_8, %c0_9, %c0_10], %12 {strides = array<i32>} : memref<2x2x128xf32, #tpu.memory_space<vmem>>, vector<2x2x128xf32>,
      %cst_11 = arith.constant 0.000000e+00 : f32
      %14 = vector.broadcast %cst_11 : f32 to vector<2x2x128xf32>
      %c0_12 = arith.constant 0 : index
      %c0_13 = arith.constant 0 : index
      %c0_14 = arith.constant 0 : index
      %15 = vector.load %arg11[%c0_12, %c0_13, %c0_14] : memref<2x2x128xf32, #tpu.memory_space<vmem>>, vector<2x2x128xf32>
      tpu.vector_store %arg11[%c0_12, %c0_13, %c0_14], %14 {strides = array<i32>} : memref<2x2x128xf32, #tpu.memory_space<vmem>>, vector<2x2x128xf32>,
      %cst_15 = arith.constant 0.000000e+00 : f32
      %16 = vector.broadcast %cst_15 : f32 to vector<32x128xf32>
      %c0_16 = arith.constant 0 : index
      %c0_17 = arith.constant 0 : index
      %17 = vector.load %arg12[%c0_16, %c0_17] : memref<32x128xf32, #tpu.memory_space<vmem>>, vector<32x128xf32>
      tpu.vector_store %arg12[%c0_16, %c0_17], %16 {strides = array<i32>} : memref<32x128xf32, #tpu.memory_space<vmem>>, vector<32x128xf32>,
    } else {
    }
    %c0 = arith.constant 0 : index
    %c0_1 = arith.constant 0 : index
    %c0_2 = arith.constant 0 : index
    %3 = vector.load %arg6[%c0, %c0_1, %c0_2] : memref<1x1x512xf32, #tpu.memory_space<vmem>>, vector<1x1x512xf32>
    %4 = vector.shape_cast %3 : vector<1x1x512xf32> to vector<1x512xf32>
    %5 = vector.shape_cast %4 : vector<1x512xf32> to vector<1x512xf32>
    %6 = vector.broadcast %5 : vector<1x512xf32> to vector<2x512xf32>
    %c8_i32 = arith.constant 8 : i32
    %7 = arith.muli %arg1, %c8_i32 : i32
    %c0_i32_3 = arith.constant 0 : i32
    %c8_i32_4 = arith.constant 8 : i32
    %8 = arith.addi %c0_i32_3, %c8_i32_4 : i32
    %c1_i32 = arith.constant 1 : i32
    scf.for %arg13 = %c0_i32_3 to %8 step %c1_i32  : i32 {
      %c1_i32_8 = arith.constant 1 : i32
      %12 = arith.muli %arg13, %c1_i32_8 : i32
      %c0_i32_9 = arith.constant 0 : i32
      %13 = arith.addi %c0_i32_9, %12 : i32
      %14 = arith.index_cast %13 : i32 to index
      %c0_10 = arith.constant 0 : index
      %c0_11 = arith.constant 0 : index
      %15 = vector.load %arg2[%14, %c0_10, %c0_11] : memref<8x2x512xbf16, #tpu.memory_space<vmem>>, vector<1x2x512xbf16>
      %16 = vector.shape_cast %15 : vector<1x2x512xbf16> to vector<2x512xbf16>
      %17 = arith.extf %16 : vector<2x512xbf16> to vector<2x512xf32>
      %c0_12 = arith.constant 0 : index
      %c0_13 = arith.constant 0 : index
      %c0_14 = arith.constant 0 : index
      %18 = vector.load %arg10[%c0_12, %c0_13, %c0_14] : memref<2x2x128xf32, #tpu.memory_space<vmem>>, vector<1x2x128xf32>
      %19 = vector.shape_cast %18 : vector<1x2x128xf32> to vector<2x128xf32>
      %20 = arith.truncf %19 : vector<2x128xf32> to vector<2x128xbf16>
      %c0_15 = arith.constant 0 : index
      %c0_16 = arith.constant 0 : index
      %21 = vector.load %arg3[%c0_15, %c0_16] : memref<128x512xbf16, #tpu.memory_space<vmem>>, vector<128x512xbf16>
      %cst = arith.constant dense<0.000000e+00> : vector<2x512xf32>
      %22 = tpu.matmul %20, %21, %cst {dimension_numbers = #tpu.dot_dimension_numbers<[1], [0], [0], [1], [0, 0, 1, 1], [], []>} : vector<2x128xbf16>, vector<128x512xbf16>, vector<2x512xf32> -> vector<2x512xf32>
      %23 = arith.addf %17, %22 : vector<2x512xf32>
      %c0_17 = arith.constant 0 : index
      %c0_18 = arith.constant 0 : index
      %c0_19 = arith.constant 0 : index
      %24 = vector.load %arg11[%c0_17, %c0_18, %c0_19] : memref<2x2x128xf32, #tpu.memory_space<vmem>>, vector<1x2x128xf32>
      %25 = vector.shape_cast %24 : vector<1x2x128xf32> to vector<2x128xf32>
      %26 = vector.extract_strided_slice %23 {offsets = [0, 0], sizes = [2, 128], strides = [1, 1]} : vector<2x512xf32> to vector<2x128xf32>
      %27 = arith.negf %26 : vector<2x128xf32>
      %28 = math.exp %27 : vector<2x128xf32>
      %cst_20 = arith.constant 1.000000e+00 : f32
      %29 = vector.broadcast %cst_20 : f32 to vector<2x128xf32>
      %30 = arith.addf %29, %28 : vector<2x128xf32>
      %31 = arith.divf %29, %30 : vector<2x128xf32>
      %32 = vector.extract_strided_slice %23 {offsets = [0, 128], sizes = [2, 128], strides = [1, 1]} : vector<2x512xf32> to vector<2x128xf32>
      %33 = arith.negf %32 : vector<2x128xf32>
      %34 = math.exp %33 : vector<2x128xf32>
      %cst_21 = arith.constant 1.000000e+00 : f32
      %35 = vector.broadcast %cst_21 : f32 to vector<2x128xf32>
      %36 = arith.addf %35, %34 : vector<2x128xf32>
      %37 = arith.divf %35, %36 : vector<2x128xf32>
      %38 = vector.extract_strided_slice %23 {offsets = [0, 256], sizes = [2, 128], strides = [1, 1]} : vector<2x512xf32> to vector<2x128xf32>
      %39 = math.tanh %38 : vector<2x128xf32>
      %40 = vector.extract_strided_slice %23 {offsets = [0, 384], sizes = [2, 128], strides = [1, 1]} : vector<2x512xf32> to vector<2x128xf32>
      %41 = arith.negf %40 : vector<2x128xf32>
      %42 = math.exp %41 : vector<2x128xf32>
      %cst_22 = arith.constant 1.000000e+00 : f32
      %43 = vector.broadcast %cst_22 : f32 to vector<2x128xf32>
      %44 = arith.addf %43, %42 : vector<2x128xf32>
      %45 = arith.divf %43, %44 : vector<2x128xf32>
      %46 = arith.mulf %37, %25 : vector<2x128xf32>
      %47 = arith.mulf %31, %39 : vector<2x128xf32>
      %48 = arith.addf %46, %47 : vector<2x128xf32>
      %49 = math.tanh %48 : vector<2x128xf32>
      %50 = arith.mulf %45, %49 : vector<2x128xf32>
      %c0_23 = arith.constant 0 : index
      %c0_24 = arith.constant 0 : index
      %c0_25 = arith.constant 0 : index
      %51 = vector.load %arg10[%c0_23, %c0_24, %c0_25] : memref<2x2x128xf32, #tpu.memory_space<vmem>>, vector<1x2x128xf32>
      %52 = vector.shape_cast %51 : vector<1x2x128xf32> to vector<2x128xf32>
      %53 = vector.shape_cast %50 : vector<2x128xf32> to vector<1x2x128xf32>
      tpu.vector_store %arg10[%c0_23, %c0_24, %c0_25], %53 {strides = array<i32>} : memref<2x2x128xf32, #tpu.memory_space<vmem>>, vector<1x2x128xf32>,
      %c0_26 = arith.constant 0 : index
      %c0_27 = arith.constant 0 : index
      %c0_28 = arith.constant 0 : index
      %54 = vector.load %arg11[%c0_26, %c0_27, %c0_28] : memref<2x2x128xf32, #tpu.memory_space<vmem>>, vector<1x2x128xf32>
      %55 = vector.shape_cast %54 : vector<1x2x128xf32> to vector<2x128xf32>
      %56 = vector.shape_cast %48 : vector<2x128xf32> to vector<1x2x128xf32>
      tpu.vector_store %arg11[%c0_26, %c0_27, %c0_28], %56 {strides = array<i32>} : memref<2x2x128xf32, #tpu.memory_space<vmem>>, vector<1x2x128xf32>,
      %57 = arith.truncf %50 : vector<2x128xf32> to vector<2x128xbf16>
      %c0_29 = arith.constant 0 : index
      %c0_30 = arith.constant 0 : index
      %c0_31 = arith.constant 0 : index
      %58 = vector.load %arg4[%c0_29, %c0_30, %c0_31] : memref<1x128x512xbf16, #tpu.memory_space<vmem>>, vector<1x128x512xbf16>
      %59 = vector.shape_cast %58 : vector<1x128x512xbf16> to vector<128x512xbf16>
      %cst_32 = arith.constant dense<0.000000e+00> : vector<2x512xf32>
      %60 = tpu.matmul %57, %59, %cst_32 {dimension_numbers = #tpu.dot_dimension_numbers<[1], [0], [0], [1], [0, 0, 1, 1], [], []>} : vector<2x128xbf16>, vector<128x512xbf16>, vector<2x512xf32> -> vector<2x512xf32>
      %c1 = arith.constant 1 : index
      %c0_33 = arith.constant 0 : index
      %c0_34 = arith.constant 0 : index
      %61 = vector.load %arg10[%c1, %c0_33, %c0_34] : memref<2x2x128xf32, #tpu.memory_space<vmem>>, vector<1x2x128xf32>
      %62 = vector.shape_cast %61 : vector<1x2x128xf32> to vector<2x128xf32>
      %63 = arith.truncf %62 : vector<2x128xf32> to vector<2x128xbf16>
      %c0_35 = arith.constant 0 : index
      %c0_36 = arith.constant 0 : index
      %c0_37 = arith.constant 0 : index
      %64 = vector.load %arg5[%c0_35, %c0_36, %c0_37] : memref<1x128x512xbf16, #tpu.memory_space<vmem>>, vector<1x128x512xbf16>
      %65 = vector.shape_cast %64 : vector<1x128x512xbf16> to vector<128x512xbf16>
      %cst_38 = arith.constant dense<0.000000e+00> : vector<2x512xf32>
      %66 = tpu.matmul %63, %65, %cst_38 {dimension_numbers = #tpu.dot_dimension_numbers<[1], [0], [0], [1], [0, 0, 1, 1], [], []>} : vector<2x128xbf16>, vector<128x512xbf16>, vector<2x512xf32> -> vector<2x512xf32>
      %67 = arith.addf %60, %66 : vector<2x512xf32>
      %68 = arith.addf %67, %6 : vector<2x512xf32>
      %c1_39 = arith.constant 1 : index
      %c0_40 = arith.constant 0 : index
      %c0_41 = arith.constant 0 : index
      %69 = vector.load %arg11[%c1_39, %c0_40, %c0_41] : memref<2x2x128xf32, #tpu.memory_space<vmem>>, vector<1x2x128xf32>
      %70 = vector.shape_cast %69 : vector<1x2x128xf32> to vector<2x128xf32>
      %71 = vector.extract_strided_slice %68 {offsets = [0, 0], sizes = [2, 128], strides = [1, 1]} : vector<2x512xf32> to vector<2x128xf32>
      %72 = arith.negf %71 : vector<2x128xf32>
      %73 = math.exp %72 : vector<2x128xf32>
      %cst_42 = arith.constant 1.000000e+00 : f32
      %74 = vector.broadcast %cst_42 : f32 to vector<2x128xf32>
      %75 = arith.addf %74, %73 : vector<2x128xf32>
      %76 = arith.divf %74, %75 : vector<2x128xf32>
      %77 = vector.extract_strided_slice %68 {offsets = [0, 128], sizes = [2, 128], strides = [1, 1]} : vector<2x512xf32> to vector<2x128xf32>
      %78 = arith.negf %77 : vector<2x128xf32>
      %79 = math.exp %78 : vector<2x128xf32>
      %cst_43 = arith.constant 1.000000e+00 : f32
      %80 = vector.broadcast %cst_43 : f32 to vector<2x128xf32>
      %81 = arith.addf %80, %79 : vector<2x128xf32>
      %82 = arith.divf %80, %81 : vector<2x128xf32>
      %83 = vector.extract_strided_slice %68 {offsets = [0, 256], sizes = [2, 128], strides = [1, 1]} : vector<2x512xf32> to vector<2x128xf32>
      %84 = math.tanh %83 : vector<2x128xf32>
      %85 = vector.extract_strided_slice %68 {offsets = [0, 384], sizes = [2, 128], strides = [1, 1]} : vector<2x512xf32> to vector<2x128xf32>
      %86 = arith.negf %85 : vector<2x128xf32>
      %87 = math.exp %86 : vector<2x128xf32>
      %cst_44 = arith.constant 1.000000e+00 : f32
      %88 = vector.broadcast %cst_44 : f32 to vector<2x128xf32>
      %89 = arith.addf %88, %87 : vector<2x128xf32>
      %90 = arith.divf %88, %89 : vector<2x128xf32>
      %91 = arith.mulf %82, %70 : vector<2x128xf32>
      %92 = arith.mulf %76, %84 : vector<2x128xf32>
      %93 = arith.addf %91, %92 : vector<2x128xf32>
      %94 = math.tanh %93 : vector<2x128xf32>
      %95 = arith.mulf %90, %94 : vector<2x128xf32>
      %c1_45 = arith.constant 1 : index
      %c0_46 = arith.constant 0 : index
      %c0_47 = arith.constant 0 : index
      %96 = vector.load %arg10[%c1_45, %c0_46, %c0_47] : memref<2x2x128xf32, #tpu.memory_space<vmem>>, vector<1x2x128xf32>
      %97 = vector.shape_cast %96 : vector<1x2x128xf32> to vector<2x128xf32>
      %98 = vector.shape_cast %95 : vector<2x128xf32> to vector<1x2x128xf32>
      tpu.vector_store %arg10[%c1_45, %c0_46, %c0_47], %98 {strides = array<i32>} : memref<2x2x128xf32, #tpu.memory_space<vmem>>, vector<1x2x128xf32>,
      %c1_48 = arith.constant 1 : index
      %c0_49 = arith.constant 0 : index
      %c0_50 = arith.constant 0 : index
      %99 = vector.load %arg11[%c1_48, %c0_49, %c0_50] : memref<2x2x128xf32, #tpu.memory_space<vmem>>, vector<1x2x128xf32>
      %100 = vector.shape_cast %99 : vector<1x2x128xf32> to vector<2x128xf32>
      %101 = vector.shape_cast %93 : vector<2x128xf32> to vector<1x2x128xf32>
      tpu.vector_store %arg11[%c1_48, %c0_49, %c0_50], %101 {strides = array<i32>} : memref<2x2x128xf32, #tpu.memory_space<vmem>>, vector<1x2x128xf32>,
      %102 = arith.addi %7, %13 : i32
      %c4_i32 = arith.constant 4 : i32
      %103 = arith.cmpi sge, %102, %c4_i32 : i32
      %104 = arith.extui %103 : i1 to i32
      %c0_i32_51 = arith.constant 0 : i32
      %105 = arith.cmpi ne, %104, %c0_i32_51 : i32
      scf.if %105 {
        %c4_i32_52 = arith.constant 4 : i32
        %106 = arith.subi %102, %c4_i32_52 : i32
        %c8_i32_53 = arith.constant 8 : i32
        %107 = arith.muli %106, %c8_i32_53 : i32
        %108 = tpu.assume_multiple %107, 8 : i32
        %109 = arith.index_cast %108 : i32 to index
        %c0_54 = arith.constant 0 : index
        %110 = vector.load %arg12[%109, %c0_54] : memref<32x128xf32, #tpu.memory_space<vmem>>, vector<2x128xf32>
        tpu.vector_store %arg12[%109, %c0_54], %95 {strides = array<i32>} : memref<32x128xf32, #tpu.memory_space<vmem>>, vector<2x128xf32>,
      } else {
      }
    }
    %c8_i32_5 = arith.constant 8 : i32
    %c0_i32_6 = arith.constant 0 : i32
    %9 = arith.cmpi eq, %arg1, %c0_i32_6 : i32
    %10 = arith.extui %9 : i1 to i32
    %c0_i32_7 = arith.constant 0 : i32
    %11 = arith.cmpi ne, %10, %c0_i32_7 : i32
    scf.if %11 {
      %c0_8 = arith.constant 0 : index
      %c0_9 = arith.constant 0 : index
      %12 = vector.load %arg12[%c0_8, %c0_9] : memref<32x128xf32, #tpu.memory_space<vmem>>, vector<32x128xf32>
      %13 = arith.truncf %12 : vector<32x128xf32> to vector<32x128xbf16>
      %c0_10 = arith.constant 0 : index
      %c0_11 = arith.constant 0 : index
      %14 = vector.load %arg7[%c0_10, %c0_11] : memref<128x128xbf16, #tpu.memory_space<vmem>>, vector<128x128xbf16>
      %cst = arith.constant dense<0.000000e+00> : vector<32x128xf32>
      %15 = tpu.matmul %13, %14, %cst {dimension_numbers = #tpu.dot_dimension_numbers<[1], [0], [0], [1], [0, 0, 1, 1], [], []>} : vector<32x128xbf16>, vector<128x128xbf16>, vector<32x128xf32> -> vector<32x128xf32>
      %c0_12 = arith.constant 0 : index
      %c0_13 = arith.constant 0 : index
      %16 = vector.load %arg8[%c0_12, %c0_13] : memref<1x128xf32, #tpu.memory_space<vmem>>, vector<1x128xf32>
      %17 = vector.broadcast %16 : vector<1x128xf32> to vector<32x128xf32>
      %18 = arith.addf %15, %17 : vector<32x128xf32>
      %c0_14 = arith.constant 0 : index
      %c0_15 = arith.constant 0 : index
      %19 = vector.load %arg9[%c0_14, %c0_15] : memref<32x128xf32, #tpu.memory_space<vmem>>, vector<32x128xf32>
      tpu.vector_store %arg9[%c0_14, %c0_15], %18 {strides = array<i32>} : memref<32x128xf32, #tpu.memory_space<vmem>>, vector<32x128xf32>,
    } else {
    }
    return
  }
  func.func @transform_0(%arg0: i32, %arg1: i32) -> (i32, i32, i32) {
    %c0_i32 = arith.constant 0 : i32
    %c0_i32_0 = arith.constant 0 : i32
    return %arg1, %arg0, %c0_i32 : i32, i32, i32
  }
  func.func @transform_1(%arg0: i32, %arg1: i32) -> (i32, i32) {
    %c0_i32 = arith.constant 0 : i32
    %c0_i32_0 = arith.constant 0 : i32
    %c0_i32_1 = arith.constant 0 : i32
    return %c0_i32, %c0_i32_0 : i32, i32
  }
  func.func @transform_2(%arg0: i32, %arg1: i32) -> (i32, i32, i32) {
    %c0_i32 = arith.constant 0 : i32
    %c0_i32_0 = arith.constant 0 : i32
    %c0_i32_1 = arith.constant 0 : i32
    %c0_i32_2 = arith.constant 0 : i32
    return %c0_i32, %c0_i32_0, %c0_i32_1 : i32, i32, i32
  }
  func.func @transform_3(%arg0: i32, %arg1: i32) -> (i32, i32, i32) {
    %c0_i32 = arith.constant 0 : i32
    %c0_i32_0 = arith.constant 0 : i32
    %c0_i32_1 = arith.constant 0 : i32
    %c0_i32_2 = arith.constant 0 : i32
    return %c0_i32, %c0_i32_0, %c0_i32_1 : i32, i32, i32
  }
  func.func @transform_4(%arg0: i32, %arg1: i32) -> (i32, i32, i32) {
    %c0_i32 = arith.constant 0 : i32
    %c0_i32_0 = arith.constant 0 : i32
    %c0_i32_1 = arith.constant 0 : i32
    %c0_i32_2 = arith.constant 0 : i32
    return %c0_i32, %c0_i32_0, %c0_i32_1 : i32, i32, i32
  }
  func.func @transform_5(%arg0: i32, %arg1: i32) -> (i32, i32) {
    %c0_i32 = arith.constant 0 : i32
    %c0_i32_0 = arith.constant 0 : i32
    %c0_i32_1 = arith.constant 0 : i32
    return %c0_i32, %c0_i32_0 : i32, i32
  }
  func.func @transform_6(%arg0: i32, %arg1: i32) -> (i32, i32) {
    %c0_i32 = arith.constant 0 : i32
    %c0_i32_0 = arith.constant 0 : i32
    %c0_i32_1 = arith.constant 0 : i32
    return %c0_i32, %c0_i32_0 : i32, i32
  }
  func.func @transform_7(%arg0: i32, %arg1: i32) -> (i32, i32) {
    %c0_i32 = arith.constant 0 : i32
    %c0_i32_0 = arith.constant 0 : i32
    return %arg0, %c0_i32 : i32, i32
  }
}

</mosaic_0001>

<bundles_post_ra>
// kernel: model_forward.2
= control target key start
LH: loop header
LB: loop body
LE: loop exit
PB: predicated region body
PF: predicated region fallthrough
CT: control target
= control target key end

     0   :  { %vm31_vm0 = vcmask 64512   ;;  %vm150_vm1 = vcmask 130048   ;;  %s347_s1 = inlined_call_operand.vmem [shape: f32[8,512], index: 1, kind: input, shape index: {}]   ;;  %s348_s2 = inlined_call_operand.vmem [shape: f32[16,8], index: 2, kind: input, shape index: {}]   ;;  %s349_s3 = inlined_call_operand.vmem [shape: bf16[16,512], index: 3, kind: input, shape index: {}]   ;;  %s350_s0 = inlined_call_operand.vmem [shape: f32[16,16], index: 0, kind: input, shape index: {}]   ;;  %s351_s4 = inlined_call_operand.vmem [shape: bf16[16,512], index: 4, kind: output, shape index: {}]  }
   0x1   :  { %v27_v0 = vld [vmem:[%s347_s1] sm:$0xff]  ;;  %v28_v1 = vld [vmem:[%s347_s1 + $0x8] sm:$0xff]  ;;  %v29_v2 = vld [vmem:[%s347_s1 + $0x10] sm:$0xff] }
   0x2   :  { %53 = vmatpush.msra.mxu0 %v27_v0  ;;  %76 = vmatpush.msra.mxu1 %v28_v1  ;;  %v30_v3 = vld [vmem:[%s347_s1 + $0x18] sm:$0xff]  ;;  %v25_v4 = vld [vmem:[%s348_s2] sm:$0xff]  ;;  %v240_v5 = vld [vmem:[%s349_s3 + $0x8] sm:$0xf] }
   0x3   :  { %99 = vmatpush.msra.mxu2 %v29_v2  ;;  %122 = vmatpush.msra.mxu3 %v30_v3  ;;  %v253_v6 = vld [vmem:[%s349_s3 + $0x14] sm:$0xf0]  ;;  %v251_v7 = vld [vmem:[%s349_s3 + $0xc] sm:$0xf]  ;;  %v242_v8 = vld [vmem:[%s349_s3 + $0x18] sm:$0xf0] }
   0x4   :  { %222 = vmatmul.msk.f32.vlgmr.msra.gmra.mxu0 %vm31_vm0, %v25_v4  ;;  %224 = vmatmul.msk.f32.vlgmr.msra.gmra.mxu1 %vm31_vm0, %v25_v4  ;;  %v241_v9 = vor.u32 %v253_v6, %v240_v5  ;;  %v245_v10 = vor.u32 %v251_v7, %v242_v8  ;;  %v232_v11 = vld [vmem:[%s349_s3] sm:$0xf]  ;;  %v252_v12 = vld [vmem:[%s349_s3 + $0xc] sm:$0xf0]  ;;  %v250_v13 = vld [vmem:[%s349_s3 + $0x4] sm:$0xf] }
   0x5   :  { %226 = vmatmul.msk.f32.vlgmr.msra.gmra.mxu2 %vm31_vm0, %v25_v4  ;;  %228 = vmatmul.msk.f32.vlgmr.msra.gmra.mxu3 %vm31_vm0, %v25_v4  ;;  %v233_v14 = vor.u32 %v252_v12, %v232_v11  ;;  %v234_v15 = vld [vmem:[%s349_s3 + $0x10] sm:$0xf0]  ;;  %v26_v17 = vld [vmem:[%s348_s2 + $0x8] sm:$0xff]  ;;  %v18_v18 = vld [vmem:[%s350_s0] sm:$0xff] }
   0x6   :  { %189 = vmatpush.bf16.msrb.mxu2 %v241_v9  ;;  %203 = vmatpush.bf16.msrb.mxu3 %v245_v10  ;;  %v237_v16 = vor.u32 %v250_v13, %v234_v15  ;;  %v19_v19 = vld [vmem:[%s350_s0 + $0x8] sm:$0xff] }
   0x7   :  { %161 = vmatpush.bf16.msrb.mxu0 %v233_v14  ;;  %v20_v20 = vpack.c.bf16 %v19_v19, %v18_v18 }
   0x8   :  { %175 = vmatpush.bf16.msrb.mxu1 %v237_v16 }
   0xc   :  { %223 = vmatmul.msk.f32.gmra.mxu0 %vm31_vm0, %v26_v17  ;;  %225 = vmatmul.msk.f32.gmra.mxu1 %vm31_vm0, %v26_v17 }
   0xd   :  { %227 = vmatmul.msk.f32.gmra.mxu2 %vm31_vm0, %v26_v17  ;;  %229 = vmatmul.msk.f32.gmra.mxu3 %vm31_vm0, %v26_v17 }
  0x14   :  { %246 = vmatmul.msk.bf16.vlgmr.msrb.gmra.mxu0 %vm150_vm1, %v20_v20  ;;  %247 = vmatmul.msk.bf16.vlgmr.msrb.gmra.mxu1 %vm150_vm1, %v20_v20 }
  0x15   :  { %248 = vmatmul.msk.bf16.vlgmr.msrb.gmra.mxu2 %vm150_vm1, %v20_v20  ;;  %249 = vmatmul.msk.bf16.vlgmr.msrb.gmra.mxu3 %vm150_vm1, %v20_v20 }
  0x81   :  { %v55_v21 = vpop.f32.mrf.mxu0  ;;  %v78_v22 = vpop.f32.mrf.mxu1 }
  0x88   :  { %v101_v23 = vpop.f32.mrf.mxu2  ;;  %v124_v24 = vpop.f32.mrf.mxu3 }
  0x89   :  { %v58_v25 = vpop.f32.mrf.mxu0  ;;  %v81_v26 = vpop.f32.mrf.mxu1 }
  0x90   :  { %v104_v27 = vpop.f32.mrf.mxu2  ;;  %v127_v28 = vpop.f32.mrf.mxu3 }
  0x91   :  { %v163_v29 = vpop.f32.mrf.mxu0  ;;  %v177_v30 = vpop.f32.mrf.mxu1 }
  0x92   :  { %v164_v31 = vadd.f32 %v163_v29, %v55_v21  ;;  %v178_v32 = vadd.f32 %v177_v30, %v78_v22 }
  0x94   :  { %v210_v33 = vpack.c.bf16 %v178_v32, %v164_v31 }
  0x96   :  { %214 = vst [vmem:[%s351_s4] sm:$0xff] %v210_v33 }
  0x98   :  { %v191_v34 = vpop.f32.mrf.mxu2  ;;  %v205_v35 = vpop.f32.mrf.mxu3 }
  0x99   :  { %v192_v36 = vadd.f32 %v191_v34, %v101_v23  ;;  %v206_v37 = vadd.f32 %v205_v35, %v124_v24  ;;  %v165_v38 = vpop.f32.mrf.mxu0  ;;  %v179_v39 = vpop.f32.mrf.mxu1 }
  0x9a   :  { %v166_v40 = vadd.f32 %v165_v38, %v58_v25  ;;  %v180_v41 = vadd.f32 %v179_v39, %v81_v26 }
  0x9b   :  { %v211_v42 = vpack.c.bf16 %v206_v37, %v192_v36 }
  0x9c   :  { %v212_v43 = vpack.c.bf16 %v180_v41, %v166_v40 }
  0x9d   :  { %215 = vst [vmem:[%s351_s4 + $0x8] sm:$0xff] %v211_v42 }
  0x9e   :  { %216 = vst [vmem:[%s351_s4 + $0x10] sm:$0xff] %v212_v43 }
  0xa0   :  { %v193_v44 = vpop.f32.mrf.mxu2  ;;  %v207_v45 = vpop.f32.mrf.mxu3 }
  0xa1   :  { %v194_v46 = vadd.f32 %v193_v44, %v104_v27  ;;  %v208_v47 = vadd.f32 %v207_v45, %v127_v28 }
  0xa3   :  { %v213_v48 = vpack.c.bf16 %v208_v47, %v194_v46 }
  0xa5   :  { %217 = vst [vmem:[%s351_s4 + $0x18] sm:$0xff] %v213_v48 }

// kernel: model_forward.3
= control target key start
LH: loop header
LB: loop body
LE: loop exit
PB: predicated region body
PF: predicated region fallthrough
CT: control target
= control target key end

     0   :  { %12 = vsyncpa [#allocation6], 0  ;;  %s1712_s27 = smov [#allocation5]   ;;  %s1713_s29 = smov 256   ;;  %s2226_s0 = inlined_call_operand.vmem [shape: bf16[8,2,512], index: 0, kind: input, shape index: {}]   ;;  %s2227_s1 = inlined_call_operand.vmem [shape: bf16[128,512], index: 1, kind: input, shape index: {}]   ;;  %s2228_s2 = inlined_call_operand.vmem [shape: bf16[1,128,512], index: 2, kind: input, shape index: {}]   ;;  %s2229_s3 = inlined_call_operand.hbm [shape: bf16[1,128,512], index: 3, kind: input, shape index: {}]   ;;  %s2230_s4 = inlined_call_operand.vmem [shape: f32[1,1,512], index: 4, kind: input, shape index: {}]   ;;  %s2231_s5 = inlined_call_operand.vmem [shape: bf16[128,128], index: 5, kind: input, shape index: {}]   ;;  %s2232_s6 = inlined_call_operand.vmem [shape: f32[1,128], index: 6, kind: input, shape index: {}]   ;;  %s2233_s7 = inlined_call_operand.vmem [shape: f32[32,128], index: 7, kind: output, shape index: {}]  }
   0x1   :  { %s23_s26 = sshll.u32 %s2229_s3, 4  ;;  %s25_s28 = sshll.u32 %s1712_s27, 4  ;;  %s24_s26 = int_to_ptr.hbm [resolvable:$true] %s23_s26  ;;  %s26_s28 = int_to_ptr.vmem [resolvable:$true] %s25_s28 }
   0x2   :  { %s1714_s30 = smov 16  }
   0x3   :  { %31 = dma.hbm_to_vmem [thread:$0]  %s24_s26, 4096, %s26_s28, [#allocation6], %s1713_s29, %s1713_s29, %s1714_s30  }
   0x4   :  { %1706 = dma.done.wait [#allocation6], 4096  }
   0x5   :  { %1707 = vsyncadd [#allocation6], 4294963200  ;;  %v1715_v0 = vmov 0.0   ;;  %v1762_v1 = vld [vmem:[%s2230_s4] sm:$0xf]  ;;  %s1768_s3 = smov 0  }
   0x6   :  { %46 = vst [vmem:[#allocation2] sm:$0x3] %v1715_v0  ;;  %v56_v2 = vperm.slane %v1762_v1, 0  ;;  %v57_v3 = vperm.slane %v1762_v1, 1  ;;  %v58_v4 = vperm.slane %v1762_v1, 2  ;;  %v59_v5 = vperm.slane %v1762_v1, 3 }
   0x7   :  { %47 = vst [vmem:[#allocation2 + $0x2] sm:$0x3] %v1715_v0 }
   0x8   :  { %48 = vst [vmem:[#allocation3] sm:$0x3] %v1715_v0 }
   0x9   :  { %49 = vst [vmem:[#allocation3 + $0x2] sm:$0x3] %v1715_v0 }
   0xa   :  { %50 = vst [vmem:[#allocation4] sm:$0xff] %v1715_v0 }
   0xb   :  { %51 = vst [vmem:[#allocation4 + $0x8] sm:$0xff] %v1715_v0 }
   0xc   :  { %52 = vst [vmem:[#allocation4 + $0x10] sm:$0xff] %v1715_v0 }
   0xd   :  { %53 = vst [vmem:[#allocation4 + $0x18] sm:$0xff] %v1715_v0 }
   0xe LB: > { %v1210_v6 = vld [vmem:[%s2227_s1 + $0xe0] sm:$0xf]  ;;  %v1551_v7 = vld [vmem:[%s2227_s1 + $0xec] sm:$0xf0]  ;;  %v1549_v8 = vld [vmem:[%s2227_s1 + $0xe4] sm:$0xf]  ;;  %s1710_s3 = sphi %s1768_s3, %s70_s3  }
   0xf   : > { %v1211_v9 = vor.u32 %v1551_v7, %v1210_v6  ;;  %v1212_v10 = vld [vmem:[%s2227_s1 + $0xf0] sm:$0xf0]  ;;  %v1218_v11 = vld [vmem:[%s2227_s1 + $0xe8] sm:$0xf]  ;;  %v1552_v12 = vld [vmem:[%s2227_s1 + $0xf4] sm:$0xf0] }
  0x10   : > { %v1215_v13 = vor.u32 %v1549_v8, %v1212_v10  ;;  %v1219_v14 = vor.u32 %v1552_v12, %v1218_v11  ;;  %v1550_v15 = vld [vmem:[%s2227_s1 + $0xec] sm:$0xf]  ;;  %v1220_v16 = vld [vmem:[%s2227_s1 + $0xf8] sm:$0xf0]  ;;  %v1194_v17 = vld [vmem:[%s2227_s1 + $0xc0] sm:$0xf] }
  0x11   : > { %269 = vmatpush.bf16.msra.mxu0 %v1211_v9  ;;  %v1223_v18 = vor.u32 %v1550_v15, %v1220_v16  ;;  %v1547_v19 = vld [vmem:[%s2227_s1 + $0xcc] sm:$0xf0]  ;;  %v1545_v20 = vld [vmem:[%s2227_s1 + $0xc4] sm:$0xf]  ;;  %v1196_v21 = vld [vmem:[%s2227_s1 + $0xd0] sm:$0xf0] }
  0x12   : > { %282 = vmatpush.bf16.msra.mxu1 %v1215_v13  ;;  %295 = vmatpush.bf16.msra.mxu2 %v1219_v14  ;;  %v1195_v22 = vor.u32 %v1547_v19, %v1194_v17  ;;  %v1199_v23 = vor.u32 %v1545_v20, %v1196_v21  ;;  %v1202_v24 = vld [vmem:[%s2227_s1 + $0xc8] sm:$0xf]  ;;  %v1548_v25 = vld [vmem:[%s2227_s1 + $0xd4] sm:$0xf0]  ;;  %v1546_v26 = vld [vmem:[%s2227_s1 + $0xcc] sm:$0xf] }
  0x13   : > { %308 = vmatpush.bf16.msra.mxu3 %v1223_v18  ;;  %v1203_v27 = vor.u32 %v1548_v25, %v1202_v24  ;;  %v1204_v28 = vld [vmem:[%s2227_s1 + $0xd8] sm:$0xf0]  ;;  %v1178_v29 = vld [vmem:[%s2227_s1 + $0xa0] sm:$0xf]  ;;  %v1543_v30 = vld [vmem:[%s2227_s1 + $0xac] sm:$0xf0] }
  0x14   : > { %v1207_v31 = vor.u32 %v1546_v26, %v1204_v28  ;;  %v1541_v32 = vld [vmem:[%s2227_s1 + $0xa4] sm:$0xf]  ;;  %v1180_v33 = vld [vmem:[%s2227_s1 + $0xb0] sm:$0xf0]  ;;  %v1186_v34 = vld [vmem:[%s2227_s1 + $0xa8] sm:$0xf]  ;;  %v1179_v35 = vor.u32 %v1543_v30, %v1178_v29 }
  0x15   : > { %270 = vmatpush.bf16.msra.mxu0 %v1195_v22  ;;  %v1544_v36 = vld [vmem:[%s2227_s1 + $0xb4] sm:$0xf0]  ;;  %v1542_v37 = vld [vmem:[%s2227_s1 + $0xac] sm:$0xf]  ;;  %v1188_v38 = vld [vmem:[%s2227_s1 + $0xb8] sm:$0xf0]  ;;  %v1183_v39 = vor.u32 %v1541_v32, %v1180_v33 }
  0x16   : > { %283 = vmatpush.bf16.msra.mxu1 %v1199_v23  ;;  %296 = vmatpush.bf16.msra.mxu2 %v1203_v27  ;;  %v1187_v40 = vor.u32 %v1544_v36, %v1186_v34  ;;  %v1162_v41 = vld [vmem:[%s2227_s1 + $0x80] sm:$0xf]  ;;  %v1539_v42 = vld [vmem:[%s2227_s1 + $0x8c] sm:$0xf0]  ;;  %v1537_v43 = vld [vmem:[%s2227_s1 + $0x84] sm:$0xf]  ;;  %v1191_v44 = vor.u32 %v1542_v37, %v1188_v38 }
  0x17   : > { %309 = vmatpush.bf16.msra.mxu3 %v1207_v31  ;;  %v1164_v45 = vld [vmem:[%s2227_s1 + $0x90] sm:$0xf0]  ;;  %v1170_v46 = vld [vmem:[%s2227_s1 + $0x88] sm:$0xf]  ;;  %v1540_v47 = vld [vmem:[%s2227_s1 + $0x94] sm:$0xf0]  ;;  %v1163_v50 = vor.u32 %v1539_v42, %v1162_v41 }
  0x18   : > { %v1538_v48 = vld [vmem:[%s2227_s1 + $0x8c] sm:$0xf]  ;;  %v1172_v49 = vld [vmem:[%s2227_s1 + $0x98] sm:$0xf0]  ;;  %v1167_v51 = vor.u32 %v1537_v43, %v1164_v45  ;;  %v1171_v52 = vor.u32 %v1540_v47, %v1170_v46  ;;  %v1146_v53 = vld [vmem:[%s2227_s1 + $0x60] sm:$0xf] }
  0x19   : > { %271 = vmatpush.bf16.msra.mxu0 %v1179_v35  ;;  %v1535_v54 = vld [vmem:[%s2227_s1 + $0x6c] sm:$0xf0]  ;;  %v1533_v55 = vld [vmem:[%s2227_s1 + $0x64] sm:$0xf]  ;;  %v1175_v56 = vor.u32 %v1538_v48, %v1172_v49  ;;  %v1148_v57 = vld [vmem:[%s2227_s1 + $0x70] sm:$0xf0] }
  0x1a   : > { %284 = vmatpush.bf16.msra.mxu1 %v1183_v39  ;;  %297 = vmatpush.bf16.msra.mxu2 %v1187_v40  ;;  %v1154_v58 = vld [vmem:[%s2227_s1 + $0x68] sm:$0xf]  ;;  %v1536_v59 = vld [vmem:[%s2227_s1 + $0x74] sm:$0xf0]  ;;  %v1534_v60 = vld [vmem:[%s2227_s1 + $0x6c] sm:$0xf]  ;;  %v1147_v62 = vor.u32 %v1535_v54, %v1146_v53  ;;  %v1151_v63 = vor.u32 %v1533_v55, %v1148_v57 }
  0x1b   : > { %310 = vmatpush.bf16.msra.mxu3 %v1191_v44  ;;  %v1156_v61 = vld [vmem:[%s2227_s1 + $0x78] sm:$0xf0]  ;;  %v1155_v0 = vor.u32 %v1536_v59, %v1154_v58  ;;  %v1130_v6 = vld [vmem:[%s2227_s1 + $0x40] sm:$0xf]  ;;  %v1531_v7 = vld [vmem:[%s2227_s1 + $0x4c] sm:$0xf0] }
  0x1c   : > { %v1529_v8 = vld [vmem:[%s2227_s1 + $0x44] sm:$0xf]  ;;  %v1159_v9 = vor.u32 %v1534_v60, %v1156_v61  ;;  %v1132_v10 = vld [vmem:[%s2227_s1 + $0x50] sm:$0xf0]  ;;  %v1138_v11 = vld [vmem:[%s2227_s1 + $0x48] sm:$0xf]  ;;  %v1131_v15 = vor.u32 %v1531_v7, %v1130_v6 }
  0x1d   : > { %272 = vmatpush.bf16.msra.mxu0 %v1163_v50  ;;  %v1532_v12 = vld [vmem:[%s2227_s1 + $0x54] sm:$0xf0]  ;;  %v1530_v13 = vld [vmem:[%s2227_s1 + $0x4c] sm:$0xf]  ;;  %v1140_v14 = vld [vmem:[%s2227_s1 + $0x58] sm:$0xf0]  ;;  %v1135_v16 = vor.u32 %v1529_v8, %v1132_v10 }
  0x1e   : > { %285 = vmatpush.bf16.msra.mxu1 %v1167_v51  ;;  %298 = vmatpush.bf16.msra.mxu2 %v1171_v52  ;;  %v1139_v17 = vor.u32 %v1532_v12, %v1138_v11  ;;  %v1114_v18 = vld [vmem:[%s2227_s1 + $0x20] sm:$0xf]  ;;  %v1527_v19 = vld [vmem:[%s2227_s1 + $0x2c] sm:$0xf0]  ;;  %v1525_v20 = vld [vmem:[%s2227_s1 + $0x24] sm:$0xf]  ;;  %v1143_v21 = vor.u32 %v1530_v13, %v1140_v14 }
  0x1f   : > { %311 = vmatpush.bf16.msra.mxu3 %v1175_v56  ;;  %v1116_v22 = vld [vmem:[%s2227_s1 + $0x30] sm:$0xf0]  ;;  %v1122_v23 = vld [vmem:[%s2227_s1 + $0x28] sm:$0xf]  ;;  %v1528_v24 = vld [vmem:[%s2227_s1 + $0x34] sm:$0xf0]  ;;  %v1115_v27 = vor.u32 %v1527_v19, %v1114_v18 }
  0x20   : > { %v1526_v25 = vld [vmem:[%s2227_s1 + $0x2c] sm:$0xf]  ;;  %v1124_v26 = vld [vmem:[%s2227_s1 + $0x38] sm:$0xf0]  ;;  %v1098_v28 = vld [vmem:[%s2227_s1] sm:$0xf]  ;;  %v1119_v29 = vor.u32 %v1525_v20, %v1116_v22  ;;  %v1123_v30 = vor.u32 %v1528_v24, %v1122_v23 }
  0x21   : > { %273 = vmatpush.bf16.msra.mxu0 %v1147_v62  ;;  %v1523_v31 = vld [vmem:[%s2227_s1 + $0xc] sm:$0xf0]  ;;  %v1521_v32 = vld [vmem:[%s2227_s1 + $0x4] sm:$0xf]  ;;  %v1100_v33 = vld [vmem:[%s2227_s1 + $0x10] sm:$0xf0]  ;;  %v1127_v34 = vor.u32 %v1526_v25, %v1124_v26 }
  0x22   : > { %286 = vmatpush.bf16.msra.mxu1 %v1151_v63  ;;  %299 = vmatpush.bf16.msra.mxu2 %v1155_v0  ;;  %v1106_v35 = vld [vmem:[%s2227_s1 + $0x8] sm:$0xf]  ;;  %v1524_v36 = vld [vmem:[%s2227_s1 + $0x14] sm:$0xf0]  ;;  %v1522_v37 = vld [vmem:[%s2227_s1 + $0xc] sm:$0xf]  ;;  %v1099_v41 = vor.u32 %v1523_v31, %v1098_v28  ;;  %v1103_v45 = vor.u32 %v1521_v32, %v1100_v33 }
  0x23   : > { %312 = vmatpush.bf16.msra.mxu3 %v1159_v9  ;;  %v1108_v38 = vld [vmem:[%s2227_s1 + $0x18] sm:$0xf0]  ;;  %v1341_v39 = vld [vmem:[#allocation5 + $0xe0] sm:$0xf]  ;;  %v1615_v40 = vld [vmem:[#allocation5 + $0xec] sm:$0xf0]  ;;  %v1107_v46 = vor.u32 %v1524_v36, %v1106_v35 }
  0x24   : > { %v75_v42 = vld [vmem:[#allocation2] sm:$0x3]  ;;  %v1613_v43 = vld [vmem:[#allocation5 + $0xe4] sm:$0xf]  ;;  %v1343_v44 = vld [vmem:[#allocation5 + $0xf0] sm:$0xf0]  ;;  %v1111_v47 = vor.u32 %v1522_v37, %v1108_v38  ;;  %v1342_v48 = vor.u32 %v1615_v40, %v1341_v39 }
  0x25   : > { %274 = vmatpush.bf16.msra.mxu0 %v1131_v15  ;;  %v1349_v49 = vld [vmem:[#allocation5 + $0xe8] sm:$0xf]  ;;  %v1616_v50 = vld [vmem:[#allocation5 + $0xf4] sm:$0xf0]  ;;  %v76_v51 = vpack.c.bf16 %v75_v42, %v75_v42  ;;  %v1346_v52 = vor.u32 %v1613_v43, %v1343_v44  ;;  %v1614_v53 = vld [vmem:[#allocation5 + $0xec] sm:$0xf] }
  0x26   : > { %287 = vmatpush.bf16.msra.mxu1 %v1135_v16  ;;  %300 = vmatpush.bf16.msra.mxu2 %v1139_v17  ;;  %v1351_v54 = vld [vmem:[#allocation5 + $0xf8] sm:$0xf0]  ;;  %v1350_v55 = vor.u32 %v1616_v50, %v1349_v49  ;;  %v1325_v57 = vld [vmem:[#allocation5 + $0xc0] sm:$0xf]  ;;  %v1611_v58 = vld [vmem:[#allocation5 + $0xcc] sm:$0xf0] }
  0x27   : > { %313 = vmatpush.bf16.msra.mxu3 %v1143_v21  ;;  %v1354_v56 = vor.u32 %v1614_v53, %v1351_v54  ;;  %v1609_v59 = vld [vmem:[#allocation5 + $0xc4] sm:$0xf]  ;;  %v1326_v60 = vor.u32 %v1611_v58, %v1325_v57  ;;  %v1327_v61 = vld [vmem:[#allocation5 + $0xd0] sm:$0xf0]  ;;  %v1333_v62 = vld [vmem:[#allocation5 + $0xc8] sm:$0xf] }
  0x28   : > { %v1330_v63 = vor.u32 %v1609_v59, %v1327_v61  ;;  %v1612_v0 = vld [vmem:[#allocation5 + $0xd4] sm:$0xf0]  ;;  %v1610_v6 = vld [vmem:[#allocation5 + $0xcc] sm:$0xf]  ;;  %v1335_v7 = vld [vmem:[#allocation5 + $0xd8] sm:$0xf0] }
  0x29   : > { %275 = vmatpush.bf16.msra.mxu0 %v1115_v27  ;;  %v1334_v8 = vor.u32 %v1612_v0, %v1333_v62  ;;  %v1338_v9 = vor.u32 %v1610_v6, %v1335_v7  ;;  %v1309_v10 = vld [vmem:[#allocation5 + $0xa0] sm:$0xf]  ;;  %v1607_v11 = vld [vmem:[#allocation5 + $0xac] sm:$0xf0]  ;;  %v1605_v12 = vld [vmem:[#allocation5 + $0xa4] sm:$0xf] }
  0x2a   : > { %288 = vmatpush.bf16.msra.mxu1 %v1119_v29  ;;  %301 = vmatpush.bf16.msra.mxu2 %v1123_v30  ;;  %v1310_v13 = vor.u32 %v1607_v11, %v1309_v10  ;;  %v1311_v14 = vld [vmem:[#allocation5 + $0xb0] sm:$0xf0]  ;;  %v1317_v15 = vld [vmem:[#allocation5 + $0xa8] sm:$0xf]  ;;  %v1608_v16 = vld [vmem:[#allocation5 + $0xb4] sm:$0xf0] }
  0x2b   : > { %314 = vmatpush.bf16.msra.mxu3 %v1127_v34  ;;  %v1314_v17 = vor.u32 %v1605_v12, %v1311_v14  ;;  %v1318_v18 = vor.u32 %v1608_v16, %v1317_v15  ;;  %v1606_v19 = vld [vmem:[#allocation5 + $0xac] sm:$0xf]  ;;  %v1319_v20 = vld [vmem:[#allocation5 + $0xb8] sm:$0xf0]  ;;  %v1293_v22 = vld [vmem:[#allocation5 + $0x80] sm:$0xf] }
  0x2c   : > { %v1322_v21 = vor.u32 %v1606_v19, %v1319_v20  ;;  %v1603_v23 = vld [vmem:[#allocation5 + $0x8c] sm:$0xf0]  ;;  %v1601_v24 = vld [vmem:[#allocation5 + $0x84] sm:$0xf]  ;;  %v1295_v26 = vld [vmem:[#allocation5 + $0x90] sm:$0xf0] }
  0x2d   : > { %276 = vmatpush.bf16.msra.mxu0 %v1099_v41  ;;  %v1294_v25 = vor.u32 %v1603_v23, %v1293_v22  ;;  %v1301_v27 = vld [vmem:[#allocation5 + $0x88] sm:$0xf]  ;;  %v1298_v28 = vor.u32 %v1601_v24, %v1295_v26  ;;  %v1604_v29 = vld [vmem:[#allocation5 + $0x94] sm:$0xf0]  ;;  %v1602_v30 = vld [vmem:[#allocation5 + $0x8c] sm:$0xf] }
  0x2e   : > { %289 = vmatpush.bf16.msra.mxu1 %v1103_v45  ;;  %302 = vmatpush.bf16.msra.mxu2 %v1107_v46  ;;  %v1303_v31 = vld [vmem:[#allocation5 + $0x98] sm:$0xf0]  ;;  %v1302_v32 = vor.u32 %v1604_v29, %v1301_v27  ;;  %v1277_v34 = vld [vmem:[#allocation5 + $0x60] sm:$0xf]  ;;  %v1599_v35 = vld [vmem:[#allocation5 + $0x6c] sm:$0xf0] }
  0x2f   : > { %315 = vmatpush.bf16.msra.mxu3 %v1111_v47  ;;  %v1306_v33 = vor.u32 %v1602_v30, %v1303_v31  ;;  %v1597_v36 = vld [vmem:[#allocation5 + $0x64] sm:$0xf]  ;;  %v1278_v37 = vor.u32 %v1599_v35, %v1277_v34  ;;  %v1279_v38 = vld [vmem:[#allocation5 + $0x70] sm:$0xf0]  ;;  %v1285_v39 = vld [vmem:[#allocation5 + $0x68] sm:$0xf] }
  0x30   : > { %277 = vmatmul.bf16.vlgmr.msra.gmra.mxu0 %v76_v51  ;;  %v1600_v40 = vld [vmem:[#allocation5 + $0x74] sm:$0xf0]  ;;  %v1282_v41 = vor.u32 %v1597_v36, %v1279_v38  ;;  %v1598_v43 = vld [vmem:[#allocation5 + $0x6c] sm:$0xf]  ;;  %v1287_v44 = vld [vmem:[#allocation5 + $0x78] sm:$0xf0] }
  0x31   : > { %637 = vmatpush.bf16.msrb.mxu0 %v1342_v48  ;;  %290 = vmatmul.bf16.vlgmr.msra.gmra.mxu1 %v76_v51  ;;  %v1286_v42 = vor.u32 %v1600_v40, %v1285_v39  ;;  %v1290_v45 = vor.u32 %v1598_v43, %v1287_v44  ;;  %v1261_v46 = vld [vmem:[#allocation5 + $0x40] sm:$0xf]  ;;  %v1595_v47 = vld [vmem:[#allocation5 + $0x4c] sm:$0xf0]  ;;  %v1593_v48 = vld [vmem:[#allocation5 + $0x44] sm:$0xf] }
  0x32   : > { %650 = vmatpush.bf16.msrb.mxu1 %v1346_v52  ;;  %303 = vmatmul.bf16.vlgmr.msra.gmra.mxu2 %v76_v51  ;;  %v1262_v49 = vor.u32 %v1595_v47, %v1261_v46  ;;  %v1263_v50 = vld [vmem:[#allocation5 + $0x50] sm:$0xf0]  ;;  %v1596_v52 = vld [vmem:[#allocation5 + $0x54] sm:$0xf0]  ;;  %v1245_v58 = vld [vmem:[#allocation5 + $0x20] sm:$0xf] }
  0x33   : > { %316 = vmatmul.bf16.vlgmr.msra.gmra.mxu3 %v76_v51  ;;  %663 = vmatpush.bf16.msrb.mxu2 %v1350_v55  ;;  %v1269_v51 = vld [vmem:[#allocation5 + $0x48] sm:$0xf]  ;;  %v1266_v53 = vor.u32 %v1593_v48, %v1263_v50  ;;  %v1594_v55 = vld [vmem:[#allocation5 + $0x4c] sm:$0xf]  ;;  %v1591_v59 = vld [vmem:[#allocation5 + $0x2c] sm:$0xf0] }
  0x34   : > { %676 = vmatpush.bf16.msrb.mxu3 %v1354_v56  ;;  %v1270_v54 = vor.u32 %v1596_v52, %v1269_v51  ;;  %v1271_v56 = vld [vmem:[#allocation5 + $0x58] sm:$0xf0]  ;;  %v1246_v61 = vor.u32 %v1591_v59, %v1245_v58  ;;  %v1247_v62 = vld [vmem:[#allocation5 + $0x30] sm:$0xf0]  ;;  %v1592_v0 = vld [vmem:[#allocation5 + $0x34] sm:$0xf0] }
  0x35   : > { %638 = vmatpush.bf16.msrb.mxu0 %v1326_v60  ;;  %v1274_v57 = vor.u32 %v1594_v55, %v1271_v56  ;;  %v1589_v60 = vld [vmem:[#allocation5 + $0x24] sm:$0xf]  ;;  %s1095_s17 = sshll.u32 %s1710_s3, 2  ;;  %v1229_v11 = vld [vmem:[#allocation5] sm:$0xf]  ;;  %vm328_vm0 = vcmask 1041408  }
  0x36   : > { %651 = vmatpush.bf16.msrb.mxu1 %v1330_v63  ;;  %v1253_v63 = vld [vmem:[#allocation5 + $0x28] sm:$0xf]  ;;  %v1250_v6 = vor.u32 %v1589_v60, %v1247_v62  ;;  %v1587_v12 = vld [vmem:[#allocation5 + $0xc] sm:$0xf0]  ;;  %v1231_v15 = vld [vmem:[#allocation5 + $0x10] sm:$0xf0]  ;;  %s72_s4 = scalar_lea.vmem %s2226_s0, %s1095_s17 }
  0x37   : > { %664 = vmatpush.bf16.msrb.mxu2 %v1334_v8  ;;  %v1254_v7 = vor.u32 %v1592_v0, %v1253_v63  ;;  %v1590_v8 = vld [vmem:[#allocation5 + $0x2c] sm:$0xf]  ;;  %v1230_v14 = vor.u32 %v1587_v12, %v1229_v11  ;;  %v1237_v16 = vld [vmem:[#allocation5 + $0x8] sm:$0xf]  ;;  %v1469_v22 = vld [vmem:[%s2228_s2 + $0xe0] sm:$0xf] }
  0x38   : > { %677 = vmatpush.bf16.msrb.mxu3 %v1338_v9  ;;  %v1255_v9 = vld [vmem:[#allocation5 + $0x38] sm:$0xf0]  ;;  %v1586_v20 = vld [vmem:[#allocation5 + $0xc] sm:$0xf]  ;;  %v1583_v24 = vld [vmem:[%s2228_s2 + $0xec] sm:$0xf0] }
  0x39   : > { %639 = vmatpush.bf16.msrb.mxu0 %v1310_v13  ;;  %v1258_v10 = vor.u32 %v1590_v8, %v1255_v9  ;;  %v1585_v13 = vld [vmem:[#allocation5 + $0x4] sm:$0xf]  ;;  %v1471_v26 = vld [vmem:[%s2228_s2 + $0xf0] sm:$0xf0]  ;;  %v1470_v27 = vor.u32 %v1583_v24, %v1469_v22  ;;  %v1477_v29 = vld [vmem:[%s2228_s2 + $0xe8] sm:$0xf] }
  0x3a   : > { %652 = vmatpush.bf16.msrb.mxu1 %v1314_v17  ;;  %v1588_v17 = vld [vmem:[#allocation5 + $0x14] sm:$0xf0]  ;;  %v1584_v30 = vld [vmem:[%s2228_s2 + $0xf4] sm:$0xf0]  ;;  %v1582_v31 = vld [vmem:[%s2228_s2 + $0xec] sm:$0xf] }
  0x3b   : > { %665 = vmatpush.bf16.msrb.mxu2 %v1318_v18  ;;  %v1234_v18 = vor.u32 %v1585_v13, %v1231_v15  ;;  %v1238_v19 = vor.u32 %v1588_v17, %v1237_v16  ;;  %v1453_v34 = vld [vmem:[%s2228_s2 + $0xc0] sm:$0xf]  ;;  %v1579_v35 = vld [vmem:[%s2228_s2 + $0xcc] sm:$0xf0]  ;;  %v1577_v39 = vld [vmem:[%s2228_s2 + $0xc4] sm:$0xf] }
  0x3c   : > { %678 = vmatpush.bf16.msrb.mxu3 %v1322_v21  ;;  %v1239_v21 = vld [vmem:[#allocation5 + $0x18] sm:$0xf0]  ;;  %v1454_v38 = vor.u32 %v1579_v35, %v1453_v34  ;;  %v1455_v40 = vld [vmem:[%s2228_s2 + $0xd0] sm:$0xf0]  ;;  %v1580_v44 = vld [vmem:[%s2228_s2 + $0xd4] sm:$0xf0] }
  0x3d   : > { %640 = vmatpush.bf16.msrb.mxu0 %v1294_v25  ;;  %v1242_v23 = vor.u32 %v1586_v20, %v1239_v21  ;;  %v1581_v25 = vld [vmem:[%s2228_s2 + $0xe4] sm:$0xf]  ;;  %v1458_v43 = vor.u32 %v1577_v39, %v1455_v40  ;;  %v1463_v46 = vld [vmem:[%s2228_s2 + $0xd8] sm:$0xf0]  ;;  %v2019_v48 = vld [vmem:[%s72_s4] sm:$0xf] }
  0x3e   : > { %653 = vmatpush.bf16.msrb.mxu1 %v1298_v28  ;;  %v1474_v28 = vor.u32 %v1581_v25, %v1471_v26  ;;  %v443_v51 = vld [vmem:[#allocation2 + $0x2] sm:$0x3]  ;;  %v1573_v55 = vld [vmem:[%s2228_s2 + $0xa4] sm:$0xf]  ;;  %v1445_v58 = vld [vmem:[%s2228_s2 + $0xa8] sm:$0xf]  ;;  %v74_v11 = vunpack.c.l.bf16 %v2019_v48 }
  0x3f   : > { %666 = vmatpush.bf16.msrb.mxu2 %v1302_v32  ;;  %v1478_v32 = vor.u32 %v1584_v30, %v1477_v29  ;;  %v444_v52 = vpack.c.bf16 %v443_v51, %v443_v51  ;;  %v1576_v59 = vld [vmem:[%s2228_s2 + $0xb4] sm:$0xf0]  ;;  %v1574_v62 = vld [vmem:[%s2228_s2 + $0xac] sm:$0xf]  ;;  %v1447_v63 = vld [vmem:[%s2228_s2 + $0xb8] sm:$0xf0] }
  0x40   : > { %679 = vmatpush.bf16.msrb.mxu3 %v1306_v33  ;;  %v1479_v33 = vld [vmem:[%s2228_s2 + $0xf8] sm:$0xf0]  ;;  %v1421_v0 = vld [vmem:[%s2228_s2 + $0x80] sm:$0xf]  ;;  %v1569_v8 = vld [vmem:[%s2228_s2 + $0x84] sm:$0xf] }
  0x41   : > { %641 = vmatpush.bf16.msrb.mxu0 %v1278_v37  ;;  %v1482_v37 = vor.u32 %v1582_v31, %v1479_v33  ;;  %v1423_v9 = vld [vmem:[%s2228_s2 + $0x90] sm:$0xf0]  ;;  %v1429_v12 = vld [vmem:[%s2228_s2 + $0x88] sm:$0xf]  ;;  %v1572_v13 = vld [vmem:[%s2228_s2 + $0x94] sm:$0xf0] }
  0x42   : > { %654 = vmatpush.bf16.msrb.mxu1 %v1282_v41  ;;  %v1461_v41 = vld [vmem:[%s2228_s2 + $0xc8] sm:$0xf]  ;;  %vm330_vm1 = vcmask 1045508   ;;  %v1431_v20 = vld [vmem:[%s2228_s2 + $0x98] sm:$0xf0]  ;;  %vm332_vm2 = vcmask 1043456   ;;  %v1430_v25 = vor.u32 %v1572_v13, %v1429_v12 }
  0x43   : > { %667 = vmatpush.bf16.msrb.mxu2 %v1286_v42  ;;  %v1405_v21 = vld [vmem:[%s2228_s2 + $0x60] sm:$0xf]  ;;  %v1567_v26 = vld [vmem:[%s2228_s2 + $0x6c] sm:$0xf0]  ;;  %v1407_v29 = vld [vmem:[%s2228_s2 + $0x70] sm:$0xf0] }
  0x44   : > { %680 = vmatpush.bf16.msrb.mxu3 %v1290_v45  ;;  %v1578_v45 = vld [vmem:[%s2228_s2 + $0xcc] sm:$0xf]  ;;  %v1413_v30 = vld [vmem:[%s2228_s2 + $0x68] sm:$0xf]  ;;  %v1568_v31 = vld [vmem:[%s2228_s2 + $0x74] sm:$0xf0] }
  0x45   : > { %642 = vmatpush.bf16.msrb.mxu0 %v1262_v49  ;;  %v1462_v49 = vor.u32 %v1580_v44, %v1461_v41  ;;  %v1466_v50 = vor.u32 %v1578_v45, %v1463_v46  ;;  %v1566_v33 = vld [vmem:[%s2228_s2 + $0x6c] sm:$0xf]  ;;  %v1415_v34 = vld [vmem:[%s2228_s2 + $0x78] sm:$0xf0]  ;;  %v1414_v40 = vor.u32 %v1568_v31, %v1413_v30  ;;  %v1563_v41 = vld [vmem:[%s2228_s2 + $0x4c] sm:$0xf0] }
  0x46   : > { %655 = vmatpush.bf16.msrb.mxu1 %v1266_v53  ;;  %v1437_v53 = vld [vmem:[%s2228_s2 + $0xa0] sm:$0xf]  ;;  %v1418_v44 = vor.u32 %v1566_v33, %v1415_v34  ;;  %v1397_v45 = vld [vmem:[%s2228_s2 + $0x48] sm:$0xf]  ;;  %v1564_v46 = vld [vmem:[%s2228_s2 + $0x54] sm:$0xf0] }
  0x47   : > { %668 = vmatpush.bf16.msrb.mxu2 %v1270_v54  ;;  %v1575_v54 = vld [vmem:[%s2228_s2 + $0xac] sm:$0xf0]  ;;  %p1486_p0 = scmp.lt.s32.totalorder %s1710_s3, 4 }
  0x48   : > { %681 = vmatpush.bf16.msrb.mxu3 %v1274_v57  ;;  %v1438_v56 = vor.u32 %v1575_v54, %v1437_v53  ;;  %v1439_v57 = vld [vmem:[%s2228_s2 + $0xb0] sm:$0xf0]  ;;  %v1555_v13 = vld [vmem:[%s2228_s2 + $0xc] sm:$0xf0]  ;;  %s1487_s29 = sadd.s32 (!%p1486_p0), 4294967292, %s1710_s3 }
  0x49   : > { %643 = vmatpush.bf16.msrb.mxu0 %v1246_v61  ;;  %v1442_v60 = vor.u32 %v1573_v55, %v1439_v57  ;;  %v1446_v61 = vor.u32 %v1576_v59, %v1445_v58  ;;  %v1559_v57 = vld [vmem:[%s2228_s2 + $0x2c] sm:$0xf0]  ;;  %v1557_v58 = vld [vmem:[%s2228_s2 + $0x24] sm:$0xf]  ;;  %s1488_s30 = sshll.u32 (!%p1486_p0), %s1487_s29, 3 }
  0x4a   : > { %656 = vmatpush.bf16.msrb.mxu1 %v1250_v6  ;;  %v1450_v6 = vor.u32 %v1574_v62, %v1447_v63  ;;  %v1375_v62 = vld [vmem:[%s2228_s2 + $0x30] sm:$0xf0]  ;;  %s979_s8 = scalar_lea.vmem (!%p1486_p0), [#allocation4], %s1488_s30 }
  0x4b   : > { %669 = vmatpush.bf16.msrb.mxu2 %v1254_v7  ;;  %v1571_v7 = vld [vmem:[%s2228_s2 + $0x8c] sm:$0xf0] }
  0x4c   : > { %682 = vmatpush.bf16.msrb.mxu3 %v1258_v10 }
  0x4d   : > { %644 = vmatpush.bf16.msrb.mxu0 %v1230_v14  ;;  %v1570_v14 = vld [vmem:[%s2228_s2 + $0x8c] sm:$0xf] }
  0x4e   : > { %657 = vmatpush.bf16.msrb.mxu1 %v1234_v18  ;;  %v1422_v18 = vor.u32 %v1571_v7, %v1421_v0  ;;  %v1381_v0 = vld [vmem:[%s2228_s2 + $0x28] sm:$0xf]  ;;  %v1558_v7 = vld [vmem:[%s2228_s2 + $0x2c] sm:$0xf] }
  0x4f   : > { %670 = vmatpush.bf16.msrb.mxu2 %v1238_v19  ;;  %v1426_v19 = vor.u32 %v1569_v8, %v1423_v9  ;;  %v1383_v8 = vld [vmem:[%s2228_s2 + $0x38] sm:$0xf0] }
  0x50   : > { %683 = vmatpush.bf16.msrb.mxu3 %v1242_v23  ;;  %645 = vmatmul.bf16.vlgmr.msrb.gmra.mxu0 %v444_v52 }
  0x51   : > { %849 = vmatpush.bf16.msra.mxu0 %v1470_v27  ;;  %658 = vmatmul.bf16.vlgmr.msrb.gmra.mxu1 %v444_v52  ;;  %v1565_v27 = vld [vmem:[%s2228_s2 + $0x64] sm:$0xf] }
  0x52   : > { %862 = vmatpush.bf16.msra.mxu1 %v1474_v28  ;;  %671 = vmatmul.bf16.vlgmr.msrb.gmra.mxu2 %v444_v52  ;;  %v1434_v28 = vor.u32 %v1570_v14, %v1431_v20  ;;  %v1553_v14 = vld [vmem:[%s2228_s2 + $0x4] sm:$0xf]  ;;  %v1554_v20 = vld [vmem:[%s2228_s2 + $0xc] sm:$0xf] }
  0x53   : > { %875 = vmatpush.bf16.msra.mxu2 %v1478_v32  ;;  %684 = vmatmul.bf16.vlgmr.msrb.gmra.mxu3 %v444_v52  ;;  %v1399_v52 = vld [vmem:[%s2228_s2 + $0x58] sm:$0xf0] }
  0x54   : > { %888 = vmatpush.bf16.msra.mxu3 %v1482_v37  ;;  %v1410_v37 = vor.u32 %v1565_v27, %v1407_v29 }
  0x55   : > { %850 = vmatpush.bf16.msra.mxu0 %v1454_v38  ;;  %v1389_v38 = vld [vmem:[%s2228_s2 + $0x40] sm:$0xf] }
  0x56   : > { %863 = vmatpush.bf16.msra.mxu1 %v1458_v43  ;;  %v1391_v43 = vld [vmem:[%s2228_s2 + $0x50] sm:$0xf0]  ;;  %v1390_v54 = vor.u32 %v1563_v41, %v1389_v38 }
  0x57   : > { %876 = vmatpush.bf16.msra.mxu2 %v1462_v49 }
  0x58   : > { %889 = vmatpush.bf16.msra.mxu3 %v1466_v50 }
  0x59   : > { %851 = vmatpush.bf16.msra.mxu0 %v1438_v56  ;;  %v1373_v56 = vld [vmem:[%s2228_s2 + $0x20] sm:$0xf] }
  0x5a   : > { %864 = vmatpush.bf16.msra.mxu1 %v1442_v60  ;;  %v1374_v9 = vor.u32 %v1559_v57, %v1373_v56 }
  0x5b   : > { %877 = vmatpush.bf16.msra.mxu2 %v1446_v61  ;;  %v1398_v61 = vor.u32 %v1564_v46, %v1397_v45 }
  0x5c   : > { %890 = vmatpush.bf16.msra.mxu3 %v1450_v6  ;;  %v1560_v6 = vld [vmem:[%s2228_s2 + $0x34] sm:$0xf0] }
  0x5d   : > { %852 = vmatpush.bf16.msra.mxu0 %v1422_v18  ;;  %v1382_v12 = vor.u32 %v1560_v6, %v1381_v0  ;;  %v1556_v18 = vld [vmem:[%s2228_s2 + $0x14] sm:$0xf0] }
  0x5e   : > { %865 = vmatpush.bf16.msra.mxu1 %v1426_v19 }
  0x5f   : > { %878 = vmatpush.bf16.msra.mxu2 %v1430_v25 }
  0x60   : > { %891 = vmatpush.bf16.msra.mxu3 %v1434_v28 }
  0x62   : > { %866 = vmatpush.bf16.msra.mxu1 %v1410_v37 }
  0x63   : > { %879 = vmatpush.bf16.msra.mxu2 %v1414_v40 }
  0x64   : > { %892 = vmatpush.bf16.msra.mxu3 %v1418_v44 }
  0x67   : > { %880 = vmatpush.bf16.msra.mxu2 %v1398_v61 }
  0x6b   : > { %881 = vmatpush.bf16.msra.mxu2 %v1382_v12 }
  0xad   : > { %v278_v36 = vpop.f32.mrf.mxu0 }
  0xae   : > { %v291_v42 = vpop.f32.mrf.mxu1 }
  0xaf   : > { %v325_v47 = vrot.slane %v291_v42, 6  ;;  %v1561_v42 = vld [vmem:[%s2228_s2 + $0x44] sm:$0xf] }
  0xb0   : > { %v1394_v55 = vor.u32 %v1561_v42, %v1391_v43 }
  0xb1   : > { %v329_v22 = vsel %vm328_vm0, %v278_v36, %v325_v47  ;;  %v1406_v36 = vor.u32 %v1567_v26, %v1405_v21  ;;  %v1562_v47 = vld [vmem:[%s2228_s2 + $0x4c] sm:$0xf]  ;;  %v1367_v21 = vld [vmem:[%s2228_s2 + $0x18] sm:$0xf0] }
  0xb2   : > { %v1402_v63 = vor.u32 %v1562_v47, %v1399_v52  ;;  %867 = vmatpush.bf16.msra.mxu1 %v1394_v55  ;;  %v1370_v29 = vor.u32 %v1554_v20, %v1367_v21 }
  0xb3   : > { %853 = vmatpush.bf16.msra.mxu0 %v1406_v36 }
  0xb4   : > { %893 = vmatpush.bf16.msra.mxu3 %v1402_v63 }
  0xb5   : > { %v304_v10 = vpop.f32.mrf.mxu2  ;;  %v280_v17 = vpop.f32.mrf.mxu0 }
  0xb6   : > { %v326_v15 = vrot.slane %v304_v10, 4  ;;  %v317_v16 = vpop.f32.mrf.mxu3  ;;  %v293_v24 = vpop.f32.mrf.mxu1  ;;  %v1378_v10 = vor.u32 %v1557_v58, %v1375_v62  ;;  %v1365_v17 = vld [vmem:[%s2228_s2 + $0x8] sm:$0xf] }
  0xb7   : > { %v327_v23 = vrot.slane %v317_v16, 2  ;;  %854 = vmatpush.bf16.msra.mxu0 %v1390_v54  ;;  %v1386_v16 = vor.u32 %v1558_v7, %v1383_v8  ;;  %v1366_v26 = vor.u32 %v1556_v18, %v1365_v17 }
  0xb8   : > { %868 = vmatpush.bf16.msra.mxu1 %v1378_v10 }
  0xb9   : > { %v331_v32 = vsel %vm330_vm1, %v326_v15, %v327_v23  ;;  %v1359_v15 = vld [vmem:[%s2228_s2 + $0x10] sm:$0xf0]  ;;  %894 = vmatpush.bf16.msra.mxu3 %v1386_v16  ;;  %882 = vmatpush.bf16.msra.mxu2 %v1366_v26 }
  0xba   : > { %v333_v35 = vsel %vm332_vm2, %v329_v22, %v331_v32  ;;  %v1362_v24 = vor.u32 %v1553_v14, %v1359_v15 }
  0xbb   : > { %v2099_v39 = vadd.f32 %v333_v35, %v74_v11  ;;  %v1357_v11 = vld [vmem:[%s2228_s2] sm:$0xf]  ;;  %855 = vmatpush.bf16.msra.mxu0 %v1374_v9 }
  0xbc   : > { %v1358_v23 = vor.u32 %v1555_v13, %v1357_v11  ;;  %869 = vmatpush.bf16.msra.mxu1 %v1362_v24 }
  0xbd   : > { %v1224_v48 = vmul.f32 -1.442695, %v2099_v39  ;;  %v357_v49 = vrot.slane %v2099_v39, 2  ;;  %v381_v50 = vrot.slane %v2099_v39, 6  ;;  %v306_v51 = vpop.f32.mrf.mxu2  ;;  %895 = vmatpush.bf16.msra.mxu3 %v1370_v29  ;;  %v378_v34 = vrot.slane %v2099_v39, 4 }
  0xbe   : > { %v319_v53 = vpop.f32.mrf.mxu3  ;;  %v336_v51 = vld [vmem:[#allocation3] sm:$0x3] }
  0xbf   : > { %1645 = vpow2.f32 %v1224_v48  ;;  %v1225_v59 = vmul.f32 -1.442695, %v357_v49  ;;  %v1226_v60 = vmul.f32 -1.442695, %v381_v50  ;;  %856 = vmatpush.bf16.msra.mxu0 %v1358_v23 }
  0xc1   : > { %1647 = vpow2.f32 %v1225_v59 }
  0xc2   : > { %1649 = vpow2.f32 %v1226_v60 }
  0xc5   : > { %v1646_v19 = vpop.eup %1645 }
  0xc6   : > { %v340_v22 = vadd.f32 1.0, %v1646_v19 }
  0xc7   : > { %v1648_v25 = vpop.eup %1647 }
  0xc8   : > { %v1650_v27 = vpop.eup %1649  ;;  %1651 = vrcp.f32 %v340_v22  ;;  %v362_v28 = vadd.f32 1.0, %v1648_v25  ;;  %v352_v38 = vand.u32 2147483648, %v340_v22  ;;  %v350_v43 = vand.u32 2147483647, %v340_v22 }
  0xc9   : > { %v386_v30 = vadd.f32 1.0, %v1650_v27  ;;  %vm346_vm4 = vweird.f32 %v340_v22 }
  0xca   : > { %1653 = vrcp.f32 %v362_v28  ;;  %v374_v44 = vand.u32 2147483648, %v362_v28  ;;  %v372_v47 = vand.u32 2147483647, %v362_v28  ;;  %v353_v48 = vor.u32 1.1754944e-38, %v352_v38 }
  0xcb   : > { %1655 = vrcp.f32 %v386_v30  ;;  %vm351_vm7 = vcmp.eq.f32.partialorder %v350_v43, 8.507059e+37  ;;  %vm368_vm8 = vweird.f32 %v362_v28  ;;  %v398_v62 = vand.u32 2147483648, %v386_v30 }
  0xcc   : > { %1657 = vtanh.f32 %v378_v34  ;;  %v375_v53 = vor.u32 1.1754944e-38, %v374_v44  ;;  %vm373_vm10 = vcmp.eq.f32.partialorder %v372_v47, 8.507059e+37  ;;  %vm392_vm12 = vweird.f32 %v386_v30 }
  0xcd   : > { %v396_v63 = vand.u32 2147483647, %v386_v30  ;;  %v399_v6 = vor.u32 1.1754944e-38, %v398_v62  ;;  %v646_v11 = vpop.f32.mrf.mxu0  ;;  %v906_v62 = vld [vmem:[#allocation3 + $0x2] sm:$0x3] }
  0xce   : > { %v1652_v31 = vpop.eup %1651  ;;  %v659_v12 = vpop.f32.mrf.mxu1 }
  0xcf   : > { %v342_v32 = vmul.f32 %v1652_v31, %v340_v22  ;;  %vm347_vm3 = vweird.f32 %v1652_v31  ;;  %vm397_vm14 = vcmp.eq.f32.partialorder %v396_v63, 8.507059e+37 }
  0xd0   : > { %v1654_v33 = vpop.eup %1653  ;;  %vm348_vm6 = vmor %vm346_vm4, %vm347_vm3 }
  0xd1   : > { %v1656_v35 = vpop.eup %1655  ;;  %v343_v36 = vsub.f32 1.0, %v342_v32  ;;  %v364_v37 = vmul.f32 %v1654_v33, %v362_v28  ;;  %vm369_vm5 = vweird.f32 %v1654_v33 }
  0xd2   : > { %v388_v40 = vmul.f32 %v1656_v35, %v386_v30  ;;  %vm370_vm9 = vmor %vm368_vm8, %vm369_vm5  ;;  %v1658_v55 = vpop.eup %1657  ;;  %vm393_vm11 = vweird.f32 %v1656_v35 }
  0xd3   : > { %v365_v41 = vsub.f32 1.0, %v364_v37  ;;  %v344_v42 = vmul.f32 %v1652_v31, %v343_v36  ;;  %vm394_vm13 = vmor %vm392_vm12, %vm393_vm11 }
  0xd4   : > { %v389_v49 = vsub.f32 1.0, %v388_v40 }
  0xd5   : > { %v345_v45 = vadd.f32 %v1652_v31, %v344_v42  ;;  %v366_v46 = vmul.f32 %v1654_v33, %v365_v41  ;;  %v648_v13 = vpop.f32.mrf.mxu0  ;;  %v672_v16 = vpop.f32.mrf.mxu2 }
  0xd6   : > { %v390_v57 = vmul.f32 %v1656_v35, %v389_v49  ;;  %v685_v14 = vpop.f32.mrf.mxu3  ;;  %v661_v15 = vpop.f32.mrf.mxu1 }
  0xd7   : > { %v349_v39 = vsel %vm348_vm6, %v1652_v31, %v345_v45  ;;  %v367_v50 = vadd.f32 %v1654_v33, %v366_v46 }
  0xd8   : > { %v354_v52 = vsel %vm351_vm7, %v353_v48, %v349_v39  ;;  %v391_v61 = vadd.f32 %v1656_v35, %v390_v57 }
  0xd9   : > { %v371_v54 = vsel %vm370_vm9, %v1654_v33, %v367_v50  ;;  %v403_v59 = vmul.f32 %v1658_v55, %v354_v52 }
  0xda   : > { %v376_v56 = vsel %vm373_vm10, %v375_v53, %v371_v54  ;;  %v395_v0 = vsel %vm394_vm13, %v1656_v35, %v391_v61 }
  0xdb   : > { %v402_v58 = vmul.f32 %v376_v56, %v336_v51  ;;  %v400_v8 = vsel %vm397_vm14, %v399_v6, %v395_v0 }
  0xdd   : > { %v404_v60 = vadd.f32 %v403_v59, %v402_v58  ;;  %v674_v18 = vpop.f32.mrf.mxu2 }
  0xde   : > { %v687_v17 = vpop.f32.mrf.mxu3 }
  0xdf   : > { %1659 = vtanh.f32 %v404_v60  ;;  %408 = vst [vmem:[#allocation3] sm:$0x3] %v404_v60 }
  0xe5   : > { %v1660_v7 = vpop.eup %1659 }
  0xe6   : > { %v406_v9 = vmul.f32 %v1660_v7, %v400_v8 }
  0xe8   : > { %407 = vst [vmem:[#allocation2] sm:$0x3] %v406_v9  ;;  %v409_v10 = vpack.c.bf16 %v406_v9, %v406_v9 }
  0xea   : > { %857 = vmatmul.bf16.vlgmr.msra.gmra.mxu0 %v409_v10  ;;  %870 = vmatmul.bf16.vlgmr.msra.gmra.mxu1 %v409_v10 }
  0xeb   : > { %883 = vmatmul.bf16.vlgmr.msra.gmra.mxu2 %v409_v10  ;;  %896 = vmatmul.bf16.vlgmr.msra.gmra.mxu3 %v409_v10 }
 0x167   : > { %v858_v19 = vpop.f32.mrf.mxu0  ;;  %v871_v20 = vpop.f32.mrf.mxu1 }
 0x168   : > { %v859_v21 = vadd.f32 %v858_v19, %v646_v11  ;;  %v872_v22 = vadd.f32 %v871_v20, %v659_v12 }
 0x16a   : > { %v901_v23 = vadd.f32 %v859_v21, %v56_v2  ;;  %v902_v24 = vadd.f32 %v872_v22, %v57_v3 }
 0x16c   : > { %v1483_v25 = vmul.f32 -1.442695, %v901_v23  ;;  %v1484_v26 = vmul.f32 -1.442695, %v902_v24 }
 0x16e   : > { %1661 = vpow2.f32 %v1483_v25  ;;  %v884_v27 = vpop.f32.mrf.mxu2  ;;  %v897_v28 = vpop.f32.mrf.mxu3 }
 0x16f   : > { %1663 = vpow2.f32 %v1484_v26  ;;  %v898_v29 = vadd.f32 %v897_v28, %v685_v14  ;;  %v860_v30 = vpop.f32.mrf.mxu0  ;;  %v873_v31 = vpop.f32.mrf.mxu1  ;;  %v885_v41 = vadd.f32 %v884_v27, %v672_v16 }
 0x171   : > { %v904_v32 = vadd.f32 %v898_v29, %v59_v5  ;;  %v903_v45 = vadd.f32 %v885_v41, %v58_v4 }
 0x173   : > { %v1485_v33 = vmul.f32 -1.442695, %v904_v32 }
 0x174   : > { %v1662_v34 = vpop.eup %1661 }
 0x175   : > { %v1664_v35 = vpop.eup %1663  ;;  %v910_v36 = vadd.f32 1.0, %v1662_v34  ;;  %1665 = vpow2.f32 %v1485_v33 }
 0x176   : > { %v929_v37 = vadd.f32 1.0, %v1664_v35  ;;  %v886_v38 = vpop.f32.mrf.mxu2  ;;  %v899_v40 = vpop.f32.mrf.mxu3 }
 0x177   : > { %1667 = vrcp.f32 %v910_v36  ;;  %v922_v50 = vand.u32 2147483648, %v910_v36  ;;  %v920_v53 = vand.u32 2147483647, %v910_v36  ;;  %vm916_vm1 = vweird.f32 %v910_v36 }
 0x178   : > { %1669 = vrcp.f32 %v929_v37  ;;  %v941_v51 = vand.u32 2147483648, %v929_v37  ;;  %v939_v55 = vand.u32 2147483647, %v929_v37  ;;  %vm935_vm2 = vweird.f32 %v929_v37 }
 0x179   : > { %v923_v58 = vor.u32 1.1754944e-38, %v922_v50  ;;  %vm921_vm5 = vcmp.eq.f32.partialorder %v920_v53, 8.507059e+37 }
 0x17a   : > { %v942_v61 = vor.u32 1.1754944e-38, %v941_v51  ;;  %vm940_vm6 = vcmp.eq.f32.partialorder %v939_v55, 8.507059e+37 }
 0x17b   : > { %v1666_v42 = vpop.eup %1665 }
 0x17c   : > { %v949_v43 = vadd.f32 1.0, %v1666_v42 }
 0x17d   : > { %v1668_v44 = vpop.eup %1667 }
 0x17e   : > { %v1670_v46 = vpop.eup %1669  ;;  %v912_v47 = vmul.f32 %v1668_v44, %v910_v36  ;;  %1671 = vrcp.f32 %v949_v43  ;;  %vm917_vm15 = vweird.f32 %v1668_v44  ;;  %v961_v15 = vand.u32 2147483648, %v949_v43 }
 0x17f   : > { %v931_v48 = vmul.f32 %v1670_v46, %v929_v37  ;;  %1673 = vtanh.f32 %v903_v45  ;;  %vm936_vm0 = vweird.f32 %v1670_v46  ;;  %vm918_vm3 = vmor %vm916_vm1, %vm917_vm15  ;;  %vm955_vm8 = vweird.f32 %v949_v43 }
 0x180   : > { %v913_v49 = vsub.f32 1.0, %v912_v47  ;;  %vm937_vm4 = vmor %vm935_vm2, %vm936_vm0  ;;  %v959_v16 = vand.u32 2147483647, %v949_v43  ;;  %v962_v18 = vor.u32 1.1754944e-38, %v961_v15 }
 0x181   : > { %v932_v39 = vsub.f32 1.0, %v931_v48 }
 0x182   : > { %v914_v52 = vmul.f32 %v1668_v44, %v913_v49  ;;  %vm960_vm10 = vcmp.eq.f32.partialorder %v959_v16, 8.507059e+37 }
 0x183   : > { %v933_v54 = vmul.f32 %v1670_v46, %v932_v39 }
 0x184   : > { %v1672_v56 = vpop.eup %1671  ;;  %v915_v57 = vadd.f32 %v1668_v44, %v914_v52 }
 0x185   : > { %v934_v59 = vadd.f32 %v1670_v46, %v933_v54  ;;  %v951_v60 = vmul.f32 %v1672_v56, %v949_v43  ;;  %v1674_v0 = vpop.eup %1673  ;;  %vm956_vm7 = vweird.f32 %v1672_v56 }
 0x186   : > { %v919_v63 = vsel %vm918_vm3, %v1668_v44, %v915_v57  ;;  %vm957_vm9 = vmor %vm955_vm8, %vm956_vm7 }
 0x187   : > { %v924_v6 = vsel %vm921_vm5, %v923_v58, %v919_v63  ;;  %v938_v7 = vsel %vm937_vm4, %v1670_v46, %v934_v59  ;;  %v952_v8 = vsub.f32 1.0, %v951_v60 }
 0x188   : > { %v943_v9 = vsel %vm940_vm6, %v942_v61, %v938_v7  ;;  %v966_v10 = vmul.f32 %v1674_v0, %v924_v6 }
 0x189   : > { %v965_v11 = vmul.f32 %v943_v9, %v906_v62  ;;  %v953_v12 = vmul.f32 %v1672_v56, %v952_v8 }
 0x18b   : > { %v967_v13 = vadd.f32 %v966_v10, %v965_v11  ;;  %v954_v14 = vadd.f32 %v1672_v56, %v953_v12 }
 0x18d   : > { %1675 = vtanh.f32 %v967_v13  ;;  %971 = vst [vmem:[#allocation3 + $0x2] sm:$0x3] %v967_v13  ;;  %v958_v17 = vsel %vm957_vm9, %v1672_v56, %v954_v14 }
 0x18e   : > { %v963_v20 = vsel %vm960_vm10, %v962_v18, %v958_v17 }
 0x192   : > { %976 = sbr.rel (%p1486_p0) target bundleno = 408 (0x198), region = 48 }
 0x193   : > { %v1676_v19 = vpop.eup %1675 }
 0x194   : > { %v969_v21 = vmul.f32 %v1676_v19, %v963_v20 }
 0x196   : > { %970 = vst [vmem:[#allocation2 + $0x2] sm:$0x3] %v969_v21 }
 0x197   : > { %980 = vst [vmem:[%s979_s8] sm:$0x3] %v969_v21 }
 0x198 PF: > { %s70_s3 = sadd.s32 1, %s1710_s3  }
 0x199   : > { %p67_p1 = scmp.ge.s32.totalorder %s70_s3, 8  }
 0x19a   :  { %v1624_v22 = vld [vmem:[%s2231_s5 + $0x38] sm:$0xff] (%p67_p1)  ;;  %v1623_v23 = vld [vmem:[%s2231_s5 + $0x30] sm:$0xff] (%p67_p1)  ;;  %v1622_v24 = vld [vmem:[%s2231_s5 + $0x28] sm:$0xff] (%p67_p1) }
 0x19b   :  { %69 = sbr.rel (!%p67_p1) target bundleno = 14 (0xe), region = 75  ;;  %1058 = vmatpush.bf16.msra.mxu0 (%p67_p1), %v1624_v22  ;;  %1625 = vmatpush.bf16.msra.mxu1 (%p67_p1), %v1624_v22  ;;  %v1621_v1 = vld [vmem:[%s2231_s5 + $0x20] sm:$0xff] (%p67_p1)  ;;  %v1620_v2 = vld [vmem:[%s2231_s5 + $0x18] sm:$0xff] (%p67_p1)  ;;  %v1619_v3 = vld [vmem:[%s2231_s5 + $0x10] sm:$0xff] (%p67_p1) }
 0x19c   :  { %v1618_v4 = vld [vmem:[%s2231_s5 + $0x8] sm:$0xff] (%p67_p1)  ;;  %v1617_v5 = vld [vmem:[%s2231_s5] sm:$0xff] (%p67_p1) }
 0x19d   :  { %v1677_v31 = vld [vmem:[%s2232_s6] ss:$0 sm:$0xff] (%p67_p1) }
 0x19e   :  { %v984_v25 = vld [vmem:[#allocation4] sm:$0xff] (%p67_p1)  ;;  %v985_v26 = vld [vmem:[#allocation4 + $0x8] sm:$0xff] (%p67_p1)  ;;  %v986_v27 = vld [vmem:[#allocation4 + $0x10] sm:$0xff] (%p67_p1) }
 0x19f   :  { %1059 = vmatpush.bf16.msra.mxu0 (%p67_p1), %v1623_v23  ;;  %1626 = vmatpush.bf16.msra.mxu1 (%p67_p1), %v1623_v23  ;;  %v987_v28 = vld [vmem:[#allocation4 + $0x18] sm:$0xff] (%p67_p1)  ;;  %v988_v29 = vpack.c.bf16 (%p67_p1), %v985_v26, %v984_v25 }
 0x1a0   :  { %v989_v30 = vpack.c.bf16 %v987_v28, %v986_v27 }
 0x1a3   :  { %1060 = vmatpush.bf16.msra.mxu0 %v1622_v24  ;;  %1627 = vmatpush.bf16.msra.mxu1 %v1622_v24 }
 0x1a7   :  { %1061 = vmatpush.bf16.msra.mxu0 %v1621_v1  ;;  %1628 = vmatpush.bf16.msra.mxu1 %v1621_v1 }
 0x1ab   :  { %1062 = vmatpush.bf16.msra.mxu0 %v1620_v2  ;;  %1629 = vmatpush.bf16.msra.mxu1 %v1620_v2 }
 0x1af   :  { %1063 = vmatpush.bf16.msra.mxu0 %v1619_v3  ;;  %1630 = vmatpush.bf16.msra.mxu1 %v1619_v3 }
 0x1b3   :  { %1064 = vmatpush.bf16.msra.mxu0 %v1618_v4  ;;  %1631 = vmatpush.bf16.msra.mxu1 %v1618_v4 }
 0x1b7   :  { %1065 = vmatpush.bf16.msra.mxu0 %v1617_v5  ;;  %1632 = vmatpush.bf16.msra.mxu1 %v1617_v5 }
 0x1ba   :  { %1066 = vmatmul.bf16.vlgmr.msra.gmra.mxu0 %v988_v29  ;;  %1071 = vmatmul.bf16.vlgmr.msra.gmra.mxu1 %v989_v30 }
 0x237   :  { %v1067_v32 = vpop.f32.mrf.mxu0  ;;  %v1072_v33 = vpop.f32.mrf.mxu1 }
 0x238   :  { %v1068_v34 = vadd.f32 %v1677_v31, %v1067_v32  ;;  %v1073_v35 = vadd.f32 %v1677_v31, %v1072_v33 }
 0x23a   :  { %1077 = vst [vmem:[%s2233_s7] sm:$0xff] %v1068_v34 }
 0x23b   :  { %1079 = vst [vmem:[%s2233_s7 + $0x10] sm:$0xff] %v1073_v35 }
 0x23f   :  { %v1069_v36 = vpop.f32.mrf.mxu0  ;;  %v1074_v37 = vpop.f32.mrf.mxu1 }
 0x240   :  { %v1070_v38 = vadd.f32 %v1677_v31, %v1069_v36  ;;  %v1075_v40 = vadd.f32 %v1677_v31, %v1074_v37 }
 0x242   :  { %1078 = vst [vmem:[%s2233_s7 + $0x8] sm:$0xff] %v1070_v38 }
 0x243   :  { %1080 = vst [vmem:[%s2233_s7 + $0x18] sm:$0xff] %v1075_v40 }
 0x244   :  { %1085 = vsyncpa [#allocation6], 1 }

</bundles_post_ra>
